<compile_context>
chip_gen: v5e
topology: v5e:2x2
jax: 0.10.0
libtpu: 0.0.40
codegen_flags: <defaults>
</compile_context>

<pallas_src>
import math

import jax
import jax.numpy as jnp
from jax.experimental import pallas as pl
from jax.experimental.pallas import tpu as pltpu

N_LAYERS = 2  # flags_obj.n_layers

# VMEM budget that is safe on every generation (v7x physical VMEM = 64 MiB).
_VMEM_RESIDENT_BUDGET = 40 * 1024 * 1024
_VMEM_LIMIT_CAP = 48 * 1024 * 1024


def _round_up(x, m):
    return ((x + m - 1) // m) * m


# --------------------------------------------------------------------------
# Pallas kernel 1: one LightGCN layer  (cur_new = G @ cur ; acc += cur_new)
# --------------------------------------------------------------------------
def _make_layer_kernel(tile_k, scale, resident_p):
    def kernel(g_ref, p_ref, acc_in_ref, cur_ref, acc_out_ref, mm_acc):
        k = pl.program_id(1)

        @pl.when(k == 0)
        def _init():
            mm_acc[...] = jnp.zeros_like(mm_acc)

        if resident_p:
            # P is VMEM-resident (DMA'd once); slice the current K block.
            start = pl.multiple_of(k * tile_k, tile_k)
            p_blk = p_ref[pl.ds(start, tile_k), :]
        else:
            p_blk = p_ref[...]

        mm_acc[...] += jnp.dot(g_ref[...], p_blk,
                               preferred_element_type=jnp.float32)

        @pl.when(k == pl.num_programs(1) - 1)
        def _finalize():
            new = mm_acc[...]
            # next-layer input (compute dtype, e.g. bf16)
            cur_ref[...] = new.astype(cur_ref.dtype)
            # fused running sum (+ final mean scaling on the last layer)
            acc_out_ref[...] = ((acc_in_ref[...] + new) * scale).astype(
                acc_out_ref.dtype)

    return kernel


def _prop_vmem_bytes(n_pad, d_pad, tm, tk, cbytes, resident_p):
    g = 2 * tm * tk * cbytes                       # double-buffered G tiles
    if resident_p:
        # full-array BlockSpec; budget conservatively for 2 buffers.
        p = 2 * n_pad * d_pad * cbytes
    else:
        p = 2 * tk * d_pad * cbytes
    acc_in = 2 * tm * d_pad * 4
    cur_out = 2 * tm * d_pad * cbytes
    acc_out = 2 * tm * d_pad * 4
    scratch = tm * d_pad * 4
    return g + p + acc_in + cur_out + acc_out + scratch


def propagate_layer(graph, cur, acc, *, scale, tile_m=512, tile_k=512):
    """Returns (graph @ cur  [compute dtype],  (acc + graph @ cur) * scale  [f32])."""
    n = graph.shape[0]
    d = cur.shape[1]
    assert n % tile_m == 0 and n % tile_k == 0 and d % 128 == 0, (n, d)

    cdtype = cur.dtype
    cbytes = jnp.dtype(cdtype).itemsize

    resident_bytes = _prop_vmem_bytes(n, d, tile_m, tile_k, cbytes, True)
    resident_p = resident_bytes <= _VMEM_RESIDENT_BUDGET
    needed = resident_bytes if resident_p else _prop_vmem_bytes(
        n, d, tile_m, tile_k, cbytes, False)
    vmem_limit = int(min(max(needed + (4 << 20), 32 << 20), _VMEM_LIMIT_CAP))

    if resident_p:
        # Whole P in VMEM, constant index map -> fetched once, no re-stream.
        p_spec = pl.BlockSpec((n, d), lambda i, k: (0, 0))
    else:
        p_spec = pl.BlockSpec((tile_k, d), lambda i, k: (k, 0))

    grid = (n // tile_m, n // tile_k)
    return pl.pallas_call(
        _make_layer_kernel(tile_k, scale, resident_p),
        out_shape=(jax.ShapeDtypeStruct((n, d), cdtype),
                   jax.ShapeDtypeStruct((n, d), jnp.float32)),
        grid_spec=pltpu.PrefetchScalarGridSpec(
            num_scalar_prefetch=0,
            grid=grid,
            in_specs=[
                pl.BlockSpec((tile_m, tile_k), lambda i, k: (i, k)),
                p_spec,
                pl.BlockSpec((tile_m, d), lambda i, k: (i, 0)),
            ],
            out_specs=[
                pl.BlockSpec((tile_m, d), lambda i, k: (i, 0)),
                pl.BlockSpec((tile_m, d), lambda i, k: (i, 0)),
            ],
            scratch_shapes=[pltpu.VMEM((tile_m, d), jnp.float32)],
        ),
        input_output_aliases={2: 1},   # acc is updated in place
        compiler_params=pltpu.CompilerParams(
            dimension_semantics=("parallel", "arbitrary"),
            vmem_limit_bytes=vmem_limit,
        ),
    )(graph, cur, acc)


# --------------------------------------------------------------------------
# Pallas kernel 2: blocked scores + stable-softplus mean
# --------------------------------------------------------------------------
def _make_loss_kernel(batch, tb):
    inv_b = 1.0 / float(batch)

    def kernel(u_ref, a_ref, s_ref, out_ref, acc_ref):
        b = pl.program_id(0)

        @pl.when(b == 0)
        def _init():
            acc_ref[...] = jnp.zeros_like(acc_ref)

        u = u_ref[...].astype(jnp.float32)
        a = a_ref[...].astype(jnp.float32)
        s = s_ref[...].astype(jnp.float32)

        # strong_score - adjacent_score == sum(u * (s - a)) per row
        diff = jnp.sum(u * (s - a), axis=-1, keepdims=True)        # (tb, 1)
        # numerically stable softplus
        sp = jnp.maximum(diff, 0.0) + jnp.log1p(jnp.exp(-jnp.abs(diff)))
        # mask padded batch rows
        row = jax.lax.broadcasted_iota(jnp.int32, sp.shape, 0) + b * tb
        sp = jnp.where(row < batch, sp, 0.0)
        acc_ref[...] += sp

        @pl.when(b == pl.num_programs(0) - 1)
        def _finalize():
            out_ref[...] = (jnp.sum(acc_ref[...], keepdims=True)
                            * inv_b).astype(out_ref.dtype)

    return kernel


def fused_scores_softplus_mean(u_rows, a_rows, s_rows, batch, tb):
    b_pad, d = u_rows.shape
    assert b_pad % tb == 0
    out = pl.pallas_call(
        _make_loss_kernel(batch, tb),
        out_shape=jax.ShapeDtypeStruct((1, 1), jnp.float32),
        grid_spec=pltpu.PrefetchScalarGridSpec(
            num_scalar_prefetch=0,
            grid=(b_pad // tb,),
            in_specs=[
                pl.BlockSpec((tb, d), lambda b: (b, 0)),
                pl.BlockSpec((tb, d), lambda b: (b, 0)),
                pl.BlockSpec((tb, d), lambda b: (b, 0)),
            ],
            out_specs=pl.BlockSpec((1, 1), lambda b: (0, 0)),
            scratch_shapes=[pltpu.VMEM((tb, 1), jnp.float32)],
        ),
        compiler_params=pltpu.CompilerParams(
            dimension_semantics=("arbitrary",)),
    )(u_rows, a_rows, s_rows)
    return out[0, 0]


# --------------------------------------------------------------------------
# wrapper (padding / layer loop / gather glue in plain JAX)
# --------------------------------------------------------------------------
def mia_forward(graph, user_preference, item_preference,
                users, adjacent_items, items_pool, items_weight, num_users,
                *, n_layers=N_LAYERS, tile=512, graph_dtype=jnp.bfloat16):
    # items_weight and the weak-item / sigmoid / BCE / hinge branches never
    # reach the returned loss in the PyTorch forward, so they are omitted.
    del items_weight
    strong_items = items_pool[:, 1]

    num_items = item_preference.shape[0]
    n = num_users + num_items
    d = user_preference.shape[1]
    d_pad = _round_up(max(d, 128), 128)   # lane-dense embedding dim
    n_pad = _round_up(n, tile)            # exact tile multiples -> clean grid

    pref0 = jnp.concatenate([user_preference, item_preference],
                            axis=0).astype(jnp.float32)
    pref0 = jnp.pad(pref0, ((0, n_pad - n), (0, d_pad - d)))
    # bf16 default halves HBM traffic on the dominant N x N graph stream
    # (accumulation stays f32 in-kernel); pass graph_dtype=jnp.float32 for
    # reference-precision semantics.
    g = jnp.pad(graph, ((0, n_pad - n), (0, n_pad - n))).astype(graph_dtype)

    inv_layers = 1.0 / float(n_layers + 1)
    cur = pref0.astype(graph_dtype)
    acc = pref0                           # f32 running sum over layers
    for layer in range(n_layers):
        scale = inv_layers if layer == n_layers - 1 else 1.0
        cur, acc = propagate_layer(g, cur, acc, scale=scale,
                                   tile_m=tile, tile_k=tile)
    merged = acc if n_layers > 0 else pref0 * inv_layers   # (n_pad, d_pad) f32

    # Item rows live at offset num_users inside `merged` (== torch.split).
    users_idx = users.astype(jnp.int32)
    adj_idx = adjacent_items.astype(jnp.int32) + num_users
    strong_idx = strong_items.astype(jnp.int32) + num_users

    u_rows = jnp.take(merged, users_idx, axis=0)
    a_rows = jnp.take(merged, adj_idx, axis=0)
    s_rows = jnp.take(merged, strong_idx, axis=0)

    batch = users_idx.shape[0]
    tb = min(512, _round_up(batch, 8))
    b_pad = _round_up(batch, tb)
    pad_b = b_pad - batch
    if pad_b:
        u_rows = jnp.pad(u_rows, ((0, pad_b), (0, 0)))
        a_rows = jnp.pad(a_rows, ((0, pad_b), (0, 0)))
        s_rows = jnp.pad(s_rows, ((0, pad_b), (0, 0)))

    # TODO(synk): the sparse-graph dropout path (training-only) and the dead
    # sigmoid/BCE/hinge/weak-item terms of the PyTorch forward are omitted.
    return fused_scores_softplus_mean(u_rows, a_rows, s_rows, batch, tb)


# --------------------------------------------------------------------------
# pure-JAX reference for the correctness check
# --------------------------------------------------------------------------
def reference_forward(graph, user_preference, item_preference,
                      users, adjacent_items, items_pool, num_users,
                      n_layers=N_LAYERS):
    pref = jnp.concatenate([user_preference, item_preference], axis=0)
    all_p = [pref]
    cur = pref
    for _ in range(n_layers):
        cur = graph @ cur
        all_p.append(cur)
    merged = jnp.mean(jnp.stack(all_p, axis=-1), axis=-1)
    u_p, i_p = merged[:num_users], merged[num_users:]
    up = u_p[users]
    ap = i_p[adjacent_items]
    sp = i_p[items_pool[:, 1]]
    adj_s = jnp.sum(up * ap, axis=-1)
    strong_s = jnp.sum(up * sp, axis=-1)
    return jnp.mean(jax.nn.softplus(strong_s - adj_s))


if __name__ == "__main__":
    key = jax.random.PRNGKey(0)
    num_users, num_items = 24, 40
    embedding_dim = 32
    num_community = 8
    batch = 8
    n_nodes = num_users + num_items

    k1, k2, k3, k4, k5, k6, k7 = jax.random.split(key, 7)

    # deterministic parameter init (PGcn.init_weight: uniform(-stdv, stdv))
    stdv = 1.0 / math.sqrt(num_community)
    user_preference = jax.random.uniform(k1, (num_users, embedding_dim),
                                         jnp.float32, -stdv, stdv)
    item_preference = jax.random.uniform(k2, (num_items, embedding_dim),
                                         jnp.float32, -stdv, stdv)

    # synthetic symmetric-normalized bipartite graph (dense stand-in for the
    # torch sparse symmetric_Graph)
    R = jax.random.bernoulli(k3, 0.15, (num_users, num_items)).astype(jnp.float32)
    A = jnp.zeros((n_nodes, n_nodes), jnp.float32)
    A = A.at[:num_users, num_users:].set(R)
    A = A.at[num_users:, :num_users].set(R.T)
    deg = jnp.sum(A, axis=1)
    d_inv_sqrt = jnp.where(deg > 0, 1.0 / jnp.sqrt(deg), 0.0)
    graph = A * d_inv_sqrt[:, None] * d_inv_sqrt[None, :]

    users = jax.random.randint(k4, (batch,), 0, num_users)
    adjacent_items = jax.random.randint(k5, (batch,), 0, num_items)
    items_pool = jax.random.randint(k6, (batch, 2), 0, num_items)
    items_weight = jax.random.uniform(k7, (batch, 2), jnp.float32)

    ref = reference_forward(graph, user_preference, item_preference,
                            users, adjacent_items, items_pool, num_users)

    # full-precision path (exact check of the kernel math)
    loss_f32 = mia_forward(graph, user_preference, item_preference,
                           users, adjacent_items, items_pool, items_weight,
                           num_users, graph_dtype=jnp.float32)
    loss_f32 = jax.block_until_ready(loss_f32)
    assert abs(float(loss_f32) - float(ref)) < 1e-3, (float(loss_f32), float(ref))

    # default bf16-G path (looser tolerance for the reduced-precision stream)
    loss_bf16 = mia_forward(graph, user_preference, item_preference,
                            users, adjacent_items, items_pool, items_weight,
                            num_users)
    loss_bf16 = jax.block_until_ready(loss_bf16)
    assert abs(float(loss_bf16) - float(ref)) < 2e-2, (float(loss_bf16), float(ref))

    print("KERNEL_OK")
</pallas_src>

<mosaic_0001>
module attributes {stable_mosaic.version = 11 : i64} {
  func.func @kernel(%arg0: i32, %arg1: i32, %arg2: memref<512x512xf32, #tpu.memory_space<vmem>>, %arg3: memref<512x128xf32, #tpu.memory_space<vmem>>, %arg4: memref<512x128xf32, #tpu.memory_space<vmem>>, %arg5: memref<512x128xf32, #tpu.memory_space<vmem>>, %arg6: memref<512x128xf32, #tpu.memory_space<vmem>>, %arg7: memref<512x128xf32, #tpu.memory_space<vmem>>) attributes {dimension_semantics = [#tpu.dimension_semantics<parallel>, #tpu.dimension_semantics<arbitrary>], iteration_bounds = array<i64: 1, 1>, scalar_prefetch = 0 : i64, scratch_operands = 1 : i64, tpu.core_type = #tpu.core_type<tc>, window_params = [{transform_indices = @transform_0, window_bounds = array<i64: 512, 512>}, {pipeline_mode = #tpu.pipeline_mode<synchronous>, transform_indices = @transform_1, window_bounds = array<i64: 512, 128>}, {transform_indices = @transform_2, window_bounds = array<i64: 512, 128>}, {transform_indices = @transform_3, window_bounds = array<i64: 512, 128>}, {transform_indices = @transform_4, window_bounds = array<i64: 512, 128>}]} {
    %c0_i32 = arith.constant 0 : i32
    %0 = arith.cmpi eq, %arg1, %c0_i32 : i32
    %1 = arith.extui %0 : i1 to i32
    %c0_i32_0 = arith.constant 0 : i32
    %2 = arith.cmpi ne, %1, %c0_i32_0 : i32
    scf.if %2 {
      %cst_9 = arith.constant 0.000000e+00 : f32
      %15 = vector.broadcast %cst_9 : f32 to vector<512x128xf32>
      %c0_10 = arith.constant 0 : index
      %c0_11 = arith.constant 0 : index
      %16 = vector.load %arg7[%c0_10, %c0_11] : memref<512x128xf32, #tpu.memory_space<vmem>>, vector<512x128xf32>
      tpu.vector_store %arg7[%c0_10, %c0_11], %15 {strides = array<i32>} : memref<512x128xf32, #tpu.memory_space<vmem>>, vector<512x128xf32>,
    } else {
    }
    %c512_i32 = arith.constant 512 : i32
    %3 = arith.muli %arg1, %c512_i32 : i32
    %4 = tpu.assume_multiple %3, 512 : i32
    %5 = arith.index_cast %4 : i32 to index
    %c0 = arith.constant 0 : index
    %6 = vector.load %arg3[%5, %c0] : memref<512x128xf32, #tpu.memory_space<vmem>>, vector<512x128xf32>
    %c0_1 = arith.constant 0 : index
    %c0_2 = arith.constant 0 : index
    %7 = vector.load %arg7[%c0_1, %c0_2] : memref<512x128xf32, #tpu.memory_space<vmem>>, vector<512x128xf32>
    %c0_3 = arith.constant 0 : index
    %c0_4 = arith.constant 0 : index
    %8 = vector.load %arg2[%c0_3, %c0_4] : memref<512x512xf32, #tpu.memory_space<vmem>>, vector<512x512xf32>
    %cst = arith.constant dense<0.000000e+00> : vector<512x128xf32>
    %9 = tpu.matmul %8, %6, %cst {dimension_numbers = #tpu.dot_dimension_numbers<[1], [0], [0], [1], [0, 0, 1, 1], [], []>} : vector<512x512xf32>, vector<512x128xf32>, vector<512x128xf32> -> vector<512x128xf32>
    %10 = arith.addf %7, %9 : vector<512x128xf32>
    %c0_5 = arith.constant 0 : index
    %c0_6 = arith.constant 0 : index
    %11 = vector.load %arg7[%c0_5, %c0_6] : memref<512x128xf32, #tpu.memory_space<vmem>>, vector<512x128xf32>
    tpu.vector_store %arg7[%c0_5, %c0_6], %10 {strides = array<i32>} : memref<512x128xf32, #tpu.memory_space<vmem>>, vector<512x128xf32>,
    %c0_i32_7 = arith.constant 0 : i32
    %12 = arith.cmpi eq, %arg1, %c0_i32_7 : i32
    %13 = arith.extui %12 : i1 to i32
    %c0_i32_8 = arith.constant 0 : i32
    %14 = arith.cmpi ne, %13, %c0_i32_8 : i32
    scf.if %14 {
      %c0_9 = arith.constant 0 : index
      %c0_10 = arith.constant 0 : index
      %15 = vector.load %arg7[%c0_9, %c0_10] : memref<512x128xf32, #tpu.memory_space<vmem>>, vector<512x128xf32>
      %c0_11 = arith.constant 0 : index
      %c0_12 = arith.constant 0 : index
      %16 = vector.load %arg5[%c0_11, %c0_12] : memref<512x128xf32, #tpu.memory_space<vmem>>, vector<512x128xf32>
      tpu.vector_store %arg5[%c0_11, %c0_12], %15 {strides = array<i32>} : memref<512x128xf32, #tpu.memory_space<vmem>>, vector<512x128xf32>,
      %c0_13 = arith.constant 0 : index
      %c0_14 = arith.constant 0 : index
      %17 = vector.load %arg4[%c0_13, %c0_14] : memref<512x128xf32, #tpu.memory_space<vmem>>, vector<512x128xf32>
      %18 = arith.addf %17, %15 : vector<512x128xf32>
      %cst_15 = arith.constant 1.000000e+00 : f32
      %19 = vector.broadcast %cst_15 : f32 to vector<512x128xf32>
      %20 = arith.mulf %18, %19 : vector<512x128xf32>
      %c0_16 = arith.constant 0 : index
      %c0_17 = arith.constant 0 : index
      %21 = vector.load %arg6[%c0_16, %c0_17] : memref<512x128xf32, #tpu.memory_space<vmem>>, vector<512x128xf32>
      tpu.vector_store %arg6[%c0_16, %c0_17], %20 {strides = array<i32>} : memref<512x128xf32, #tpu.memory_space<vmem>>, vector<512x128xf32>,
    } else {
    }
    return
  }
  func.func @transform_0(%arg0: i32, %arg1: i32) -> (i32, i32) {
    %c0_i32 = arith.constant 0 : i32
    return %arg0, %arg1 : i32, i32
  }
  func.func @transform_1(%arg0: i32, %arg1: i32) -> (i32, i32) {
    %c0_i32 = arith.constant 0 : i32
    %c0_i32_0 = arith.constant 0 : i32
    %c0_i32_1 = arith.constant 0 : i32
    return %c0_i32, %c0_i32_0 : i32, i32
  }
  func.func @transform_2(%arg0: i32, %arg1: i32) -> (i32, i32) {
    %c0_i32 = arith.constant 0 : i32
    %c0_i32_0 = arith.constant 0 : i32
    return %arg0, %c0_i32 : i32, i32
  }
  func.func @transform_3(%arg0: i32, %arg1: i32) -> (i32, i32) {
    %c0_i32 = arith.constant 0 : i32
    %c0_i32_0 = arith.constant 0 : i32
    return %arg0, %c0_i32 : i32, i32
  }
  func.func @transform_4(%arg0: i32, %arg1: i32) -> (i32, i32) {
    %c0_i32 = arith.constant 0 : i32
    %c0_i32_0 = arith.constant 0 : i32
    return %arg0, %c0_i32 : i32, i32
  }
}

</mosaic_0001>

<bundles_post_ra>
// kernel: tpu_custom_call.1
= control target key start
LH: loop header
LB: loop body
LE: loop exit
PB: predicated region body
PF: predicated region fallthrough
CT: control target
= control target key end

     0   :  { %10 = vsyncpa [#allocation4], 0  ;;  %s2187_s0 = inlined_call_operand.hbm [shape: f32[512,512], index: 0, kind: input, shape index: {}]   ;;  %s2188_s1 = inlined_call_operand.vmem [shape: f32[512,128], index: 1, kind: input, shape index: {}]   ;;  %s2189_s2 = inlined_call_operand.hbm [shape: f32[512,128], index: 2, kind: input, shape index: {}, may-alias: {2,4}]   ;;  %s2190_s3 = inlined_call_operand.hbm [shape: f32[512,128], index: 3, kind: output, shape index: {0}]   ;;  %s2191_s4 = inlined_call_operand.hbm [shape: f32[512,128], index: 4, kind: output, shape index: {1}, may-alias: {2,4}]  }
   0x1   :  { %11 = vsyncpa [#allocation7], 0 }
   0x2   :  { %12 = vsyncpa [#allocation5], 0 }
   0x3   :  { %13 = vsyncpa [#allocation10], 0  ;;  %s18_s17 = sshll.u32 %s2187_s0, 4  ;;  %s1941_s18 = smov [#allocation3]   ;;  %s19_s17 = int_to_ptr.hbm [resolvable:$true] %s18_s17 }
   0x4   :  { %s20_s19 = sshll.u32 %s1941_s18, 4  ;;  %s33_s22 = sshll.u32 %s2189_s2, 4  ;;  %s21_s19 = int_to_ptr.vmem [resolvable:$true] %s20_s19  ;;  %s34_s22 = int_to_ptr.hbm [resolvable:$true] %s33_s22 }
   0x5   :  { %s1942_s23 = smov 512   ;;  %s1943_s24 = smov 32  }
   0x6   :  { %26 = dma.hbm_to_vmem [thread:$0]  %s19_s17, 32768, %s21_s19, [#allocation4], %s1942_s23, %s1942_s23, %s1943_s24  }
   0x7   :  { %s1944_s25 = smov [#allocation6]   ;;  %s1945_s27 = smov 128  }
   0x8   :  { %s35_s26 = sshll.u32 %s1944_s25, 4  ;;  %s1946_s28 = smov 8   ;;  %s36_s26 = int_to_ptr.vmem [resolvable:$true] %s35_s26 }
   0x9   :  { %41 = dma.hbm_to_vmem [thread:$0]  %s34_s22, 8192, %s36_s26, [#allocation7], %s1945_s27, %s1945_s27, %s1946_s28  }
   0xa   :  { %1933 = dma.done.wait [#allocation4], 32768  }
   0xb   :  { %1934 = vsyncadd [#allocation4], 4294934528 }
   0xc   :  { %1935 = dma.done.wait [#allocation7], 8192  }
   0xd   :  { %1936 = vsyncadd [#allocation7], 4294959104  ;;  %v167_v0 = vld [vmem:[%s2188_s1 + $0x178] sm:$0xff]  ;;  %v166_v1 = vld [vmem:[%s2188_s1 + $0x170] sm:$0xff]  ;;  %s1797_s29 = sshll.u32 %s2190_s3, 4  ;;  %s1948_s2 = smov [#allocation9]   ;;  %s1798_s29 = int_to_ptr.hbm [resolvable:$true] %s1797_s29 }
   0xe   :  { %v183_v2 = vld [vmem:[%s2188_s1 + $0x1f8] sm:$0xff]  ;;  %922 = vmatpush.msra.mxu2 %v167_v0  ;;  %v165_v5 = vld [vmem:[%s2188_s1 + $0x168] sm:$0xff]  ;;  %v182_v6 = vld [vmem:[%s2188_s1 + $0x1f0] sm:$0xff]  ;;  %s1808_s30 = sshll.u32 %s1948_s2, 4  ;;  %s1810_s7 = sshll.u32 %s2191_s4, 4  ;;  %s1809_s30 = int_to_ptr.vmem [resolvable:$true] %s1808_s30  ;;  %s1811_s7 = int_to_ptr.hbm [resolvable:$true] %s1810_s7 }
   0xf   :  { %1131 = vmatpush.msra.mxu3 %v183_v2  ;;  %v135_v3 = vld [vmem:[%s2188_s1 + $0x78] sm:$0xff]  ;;  %v134_v7 = vld [vmem:[%s2188_s1 + $0x70] sm:$0xff]  ;;  %v181_v9 = vld [vmem:[%s2188_s1 + $0x1e8] sm:$0xff] }
  0x10   :  { %v151_v4 = vld [vmem:[%s2188_s1 + $0xf8] sm:$0xff]  ;;  %504 = vmatpush.msra.mxu0 %v135_v3  ;;  %v150_v8 = vld [vmem:[%s2188_s1 + $0xf0] sm:$0xff]  ;;  %923 = vmatpush.msra.mxu2 %v166_v1  ;;  %v133_v10 = vld [vmem:[%s2188_s1 + $0x68] sm:$0xff] }
  0x11   :  { %713 = vmatpush.msra.mxu1 %v151_v4  ;;  %1132 = vmatpush.msra.mxu3 %v182_v6  ;;  %v164_v11 = vld [vmem:[%s2188_s1 + $0x160] sm:$0xff]  ;;  %v149_v12 = vld [vmem:[%s2188_s1 + $0xe8] sm:$0xff]  ;;  %v163_v16 = vld [vmem:[%s2188_s1 + $0x158] sm:$0xff] }
  0x12   :  { %505 = vmatpush.msra.mxu0 %v134_v7  ;;  %v180_v13 = vld [vmem:[%s2188_s1 + $0x1e0] sm:$0xff]  ;;  %924 = vmatpush.msra.mxu2 %v165_v5  ;;  %v179_v17 = vld [vmem:[%s2188_s1 + $0x1d8] sm:$0xff]  ;;  %v162_v20 = vld [vmem:[%s2188_s1 + $0x150] sm:$0xff] }
  0x13   :  { %714 = vmatpush.msra.mxu1 %v150_v8  ;;  %1133 = vmatpush.msra.mxu3 %v181_v9  ;;  %v132_v14 = vld [vmem:[%s2188_s1 + $0x60] sm:$0xff]  ;;  %v131_v18 = vld [vmem:[%s2188_s1 + $0x58] sm:$0xff]  ;;  %v178_v21 = vld [vmem:[%s2188_s1 + $0x1d0] sm:$0xff] }
  0x14   :  { %v148_v15 = vld [vmem:[%s2188_s1 + $0xe0] sm:$0xff]  ;;  %506 = vmatpush.msra.mxu0 %v133_v10  ;;  %925 = vmatpush.msra.mxu2 %v164_v11  ;;  %v147_v19 = vld [vmem:[%s2188_s1 + $0xd8] sm:$0xff]  ;;  %v130_v22 = vld [vmem:[%s2188_s1 + $0x50] sm:$0xff] }
  0x15   :  { %715 = vmatpush.msra.mxu1 %v149_v12  ;;  %1134 = vmatpush.msra.mxu3 %v180_v13  ;;  %v146_v23 = vld [vmem:[%s2188_s1 + $0xd0] sm:$0xff]  ;;  %v161_v24 = vld [vmem:[%s2188_s1 + $0x148] sm:$0xff]  ;;  %v160_v28 = vld [vmem:[%s2188_s1 + $0x140] sm:$0xff] }
  0x16   :  { %507 = vmatpush.msra.mxu0 %v132_v14  ;;  %926 = vmatpush.msra.mxu2 %v163_v16  ;;  %v177_v25 = vld [vmem:[%s2188_s1 + $0x1c8] sm:$0xff]  ;;  %v176_v29 = vld [vmem:[%s2188_s1 + $0x1c0] sm:$0xff]  ;;  %v159_v32 = vld [vmem:[%s2188_s1 + $0x138] sm:$0xff] }
  0x17   :  { %716 = vmatpush.msra.mxu1 %v148_v15  ;;  %1135 = vmatpush.msra.mxu3 %v179_v17  ;;  %v129_v26 = vld [vmem:[%s2188_s1 + $0x48] sm:$0xff]  ;;  %v128_v30 = vld [vmem:[%s2188_s1 + $0x40] sm:$0xff]  ;;  %v175_v33 = vld [vmem:[%s2188_s1 + $0x1b8] sm:$0xff] }
  0x18   :  { %508 = vmatpush.msra.mxu0 %v131_v18  ;;  %927 = vmatpush.msra.mxu2 %v162_v20  ;;  %v145_v27 = vld [vmem:[%s2188_s1 + $0xc8] sm:$0xff]  ;;  %v144_v31 = vld [vmem:[%s2188_s1 + $0xc0] sm:$0xff]  ;;  %v127_v34 = vld [vmem:[%s2188_s1 + $0x38] sm:$0xff] }
  0x19   :  { %717 = vmatpush.msra.mxu1 %v147_v19  ;;  %1136 = vmatpush.msra.mxu3 %v178_v21  ;;  %v143_v35 = vld [vmem:[%s2188_s1 + $0xb8] sm:$0xff]  ;;  %v158_v36 = vld [vmem:[%s2188_s1 + $0x130] sm:$0xff]  ;;  %v157_v40 = vld [vmem:[%s2188_s1 + $0x128] sm:$0xff] }
  0x1a   :  { %509 = vmatpush.msra.mxu0 %v130_v22  ;;  %928 = vmatpush.msra.mxu2 %v161_v24  ;;  %v174_v37 = vld [vmem:[%s2188_s1 + $0x1b0] sm:$0xff]  ;;  %v173_v41 = vld [vmem:[%s2188_s1 + $0x1a8] sm:$0xff]  ;;  %v156_v44 = vld [vmem:[%s2188_s1 + $0x120] sm:$0xff] }
  0x1b   :  { %718 = vmatpush.msra.mxu1 %v146_v23  ;;  %1137 = vmatpush.msra.mxu3 %v177_v25  ;;  %v126_v38 = vld [vmem:[%s2188_s1 + $0x30] sm:$0xff]  ;;  %v125_v42 = vld [vmem:[%s2188_s1 + $0x28] sm:$0xff]  ;;  %v172_v45 = vld [vmem:[%s2188_s1 + $0x1a0] sm:$0xff] }
  0x1c   :  { %510 = vmatpush.msra.mxu0 %v129_v26  ;;  %929 = vmatpush.msra.mxu2 %v160_v28  ;;  %v142_v39 = vld [vmem:[%s2188_s1 + $0xb0] sm:$0xff]  ;;  %v141_v43 = vld [vmem:[%s2188_s1 + $0xa8] sm:$0xff]  ;;  %v124_v46 = vld [vmem:[%s2188_s1 + $0x20] sm:$0xff] }
  0x1d   :  { %719 = vmatpush.msra.mxu1 %v145_v27  ;;  %1138 = vmatpush.msra.mxu3 %v176_v29  ;;  %v140_v47 = vld [vmem:[%s2188_s1 + $0xa0] sm:$0xff]  ;;  %v155_v48 = vld [vmem:[%s2188_s1 + $0x118] sm:$0xff]  ;;  %v154_v52 = vld [vmem:[%s2188_s1 + $0x110] sm:$0xff] }
  0x1e   :  { %511 = vmatpush.msra.mxu0 %v128_v30  ;;  %930 = vmatpush.msra.mxu2 %v159_v32  ;;  %v171_v49 = vld [vmem:[%s2188_s1 + $0x198] sm:$0xff]  ;;  %v170_v53 = vld [vmem:[%s2188_s1 + $0x190] sm:$0xff]  ;;  %v153_v56 = vld [vmem:[%s2188_s1 + $0x108] sm:$0xff] }
  0x1f   :  { %720 = vmatpush.msra.mxu1 %v144_v31  ;;  %1139 = vmatpush.msra.mxu3 %v175_v33  ;;  %v123_v50 = vld [vmem:[%s2188_s1 + $0x18] sm:$0xff]  ;;  %v122_v54 = vld [vmem:[%s2188_s1 + $0x10] sm:$0xff]  ;;  %v169_v57 = vld [vmem:[%s2188_s1 + $0x188] sm:$0xff] }
  0x20   :  { %512 = vmatpush.msra.mxu0 %v127_v34  ;;  %931 = vmatpush.msra.mxu2 %v158_v36  ;;  %v139_v51 = vld [vmem:[%s2188_s1 + $0x98] sm:$0xff]  ;;  %v138_v55 = vld [vmem:[%s2188_s1 + $0x90] sm:$0xff]  ;;  %v121_v58 = vld [vmem:[%s2188_s1 + $0x8] sm:$0xff] }
  0x21   :  { %721 = vmatpush.msra.mxu1 %v143_v35  ;;  %1140 = vmatpush.msra.mxu3 %v174_v37  ;;  %v137_v59 = vld [vmem:[%s2188_s1 + $0x88] sm:$0xff]  ;;  %v152_v60 = vld [vmem:[%s2188_s1 + $0x100] sm:$0xff]  ;;  %v250_v62 = vld [vmem:[#allocation3 + $0x10] sm:$0xff] }
  0x22   :  { %513 = vmatpush.msra.mxu0 %v126_v38  ;;  %932 = vmatpush.msra.mxu2 %v157_v40  ;;  %v168_v61 = vld [vmem:[%s2188_s1 + $0x180] sm:$0xff]  ;;  %v251_v63 = vld [vmem:[#allocation3 + $0x18] sm:$0xff]  ;;  %v249_v3 = vld [vmem:[#allocation3 + $0x8] sm:$0xff] }
  0x23   :  { %722 = vmatpush.msra.mxu1 %v142_v39  ;;  %1141 = vmatpush.msra.mxu3 %v173_v41  ;;  %v120_v0 = vld [vmem:[%s2188_s1] sm:$0xff]  ;;  %v254_v4 = vld [vmem:[#allocation3 + $0x30] sm:$0xff]  ;;  %v255_v5 = vld [vmem:[#allocation3 + $0x38] sm:$0xff] }
  0x24   :  { %514 = vmatpush.msra.mxu0 %v125_v42  ;;  %933 = vmatpush.msra.mxu2 %v156_v44  ;;  %v136_v1 = vld [vmem:[%s2188_s1 + $0x80] sm:$0xff]  ;;  %v253_v7 = vld [vmem:[#allocation3 + $0x28] sm:$0xff]  ;;  %v258_v8 = vld [vmem:[#allocation3 + $0x50] sm:$0xff]  ;;  %s1947_s1 = smov [#allocation8]  }
  0x25   :  { %723 = vmatpush.msra.mxu1 %v141_v43  ;;  %1142 = vmatpush.msra.mxu3 %v172_v45  ;;  %v248_v2 = vld [vmem:[#allocation3] sm:$0xff]  ;;  %v259_v9 = vld [vmem:[#allocation3 + $0x58] sm:$0xff]  ;;  %v257_v11 = vld [vmem:[#allocation3 + $0x48] sm:$0xff]  ;;  %s1795_s25 = sshll.u32 %s1947_s1, 4  ;;  %s1796_s25 = int_to_ptr.vmem [resolvable:$true] %s1795_s25 }
  0x26   :  { %515 = vmatpush.msra.mxu0 %v124_v46  ;;  %934 = vmatpush.msra.mxu2 %v155_v48  ;;  %v252_v6 = vld [vmem:[#allocation3 + $0x20] sm:$0xff]  ;;  %v262_v12 = vld [vmem:[#allocation3 + $0x70] sm:$0xff]  ;;  %v263_v13 = vld [vmem:[#allocation3 + $0x78] sm:$0xff] }
  0x27   :  { %724 = vmatpush.msra.mxu1 %v140_v47  ;;  %1143 = vmatpush.msra.mxu3 %v171_v49  ;;  %v256_v10 = vld [vmem:[#allocation3 + $0x40] sm:$0xff]  ;;  %v261_v15 = vld [vmem:[#allocation3 + $0x68] sm:$0xff]  ;;  %v266_v16 = vld [vmem:[#allocation3 + $0x90] sm:$0xff] }
  0x28   :  { %516 = vmatpush.msra.mxu0 %v123_v50  ;;  %935 = vmatpush.msra.mxu2 %v154_v52  ;;  %v260_v14 = vld [vmem:[#allocation3 + $0x60] sm:$0xff]  ;;  %v267_v17 = vld [vmem:[#allocation3 + $0x98] sm:$0xff]  ;;  %v265_v19 = vld [vmem:[#allocation3 + $0x88] sm:$0xff] }
  0x29   :  { %725 = vmatpush.msra.mxu1 %v139_v51  ;;  %1144 = vmatpush.msra.mxu3 %v170_v53  ;;  %v264_v18 = vld [vmem:[#allocation3 + $0x80] sm:$0xff]  ;;  %v270_v20 = vld [vmem:[#allocation3 + $0xb0] sm:$0xff]  ;;  %v271_v21 = vld [vmem:[#allocation3 + $0xb8] sm:$0xff] }
  0x2a   :  { %517 = vmatpush.msra.mxu0 %v122_v54  ;;  %936 = vmatpush.msra.mxu2 %v153_v56  ;;  %v268_v22 = vld [vmem:[#allocation3 + $0xa0] sm:$0xff]  ;;  %v269_v23 = vld [vmem:[#allocation3 + $0xa8] sm:$0xff]  ;;  %v274_v24 = vld [vmem:[#allocation3 + $0xd0] sm:$0xff] }
  0x2b   :  { %726 = vmatpush.msra.mxu1 %v138_v55  ;;  %1145 = vmatpush.msra.mxu3 %v169_v57  ;;  %v275_v25 = vld [vmem:[#allocation3 + $0xd8] sm:$0xff]  ;;  %v272_v26 = vld [vmem:[#allocation3 + $0xc0] sm:$0xff]  ;;  %v273_v27 = vld [vmem:[#allocation3 + $0xc8] sm:$0xff] }
  0x2c   :  { %518 = vmatpush.msra.mxu0 %v121_v58  ;;  %937 = vmatpush.msra.mxu2 %v152_v60  ;;  %v278_v28 = vld [vmem:[#allocation3 + $0xf0] sm:$0xff]  ;;  %v279_v29 = vld [vmem:[#allocation3 + $0xf8] sm:$0xff]  ;;  %v276_v30 = vld [vmem:[#allocation3 + $0xe0] sm:$0xff] }
  0x2d   :  { %727 = vmatpush.msra.mxu1 %v137_v59  ;;  %1146 = vmatpush.msra.mxu3 %v168_v61  ;;  %v277_v31 = vld [vmem:[#allocation3 + $0xe8] sm:$0xff]  ;;  %v282_v32 = vld [vmem:[#allocation3 + $0x110] sm:$0xff]  ;;  %v283_v33 = vld [vmem:[#allocation3 + $0x118] sm:$0xff] }
  0x2e   :  { %938 = vmatmul.f32.vlgmr.msra.gmra.mxu2 %v250_v62  ;;  %1147 = vmatmul.f32.vlgmr.msra.gmra.mxu3 %v251_v63  ;;  %v280_v34 = vld [vmem:[#allocation3 + $0x100] sm:$0xff]  ;;  %v281_v35 = vld [vmem:[#allocation3 + $0x108] sm:$0xff]  ;;  %v286_v36 = vld [vmem:[#allocation3 + $0x130] sm:$0xff] }
  0x2f   :  { %519 = vmatpush.msra.mxu0 %v120_v0  ;;  %728 = vmatpush.msra.mxu1 %v136_v1  ;;  %v287_v37 = vld [vmem:[#allocation3 + $0x138] sm:$0xff]  ;;  %v284_v38 = vld [vmem:[#allocation3 + $0x120] sm:$0xff]  ;;  %v285_v39 = vld [vmem:[#allocation3 + $0x128] sm:$0xff] }
  0x30   :  { %520 = vmatmul.f32.vlgmr.msra.gmra.mxu0 %v248_v2  ;;  %729 = vmatmul.f32.vlgmr.msra.gmra.mxu1 %v249_v3  ;;  %v290_v40 = vld [vmem:[#allocation3 + $0x150] sm:$0xff]  ;;  %v291_v41 = vld [vmem:[#allocation3 + $0x158] sm:$0xff]  ;;  %v288_v42 = vld [vmem:[#allocation3 + $0x140] sm:$0xff] }
  0x31   :  { %v289_v43 = vld [vmem:[#allocation3 + $0x148] sm:$0xff]  ;;  %v294_v44 = vld [vmem:[#allocation3 + $0x170] sm:$0xff]  ;;  %v295_v45 = vld [vmem:[#allocation3 + $0x178] sm:$0xff] }
  0x32   :  { %v292_v46 = vld [vmem:[#allocation3 + $0x160] sm:$0xff]  ;;  %v293_v47 = vld [vmem:[#allocation3 + $0x168] sm:$0xff]  ;;  %v298_v48 = vld [vmem:[#allocation3 + $0x190] sm:$0xff] }
  0x33   :  { %v299_v49 = vld [vmem:[#allocation3 + $0x198] sm:$0xff]  ;;  %v296_v50 = vld [vmem:[#allocation3 + $0x180] sm:$0xff]  ;;  %v297_v51 = vld [vmem:[#allocation3 + $0x188] sm:$0xff] }
  0x34   :  { %v302_v52 = vld [vmem:[#allocation3 + $0x1b0] sm:$0xff]  ;;  %v303_v53 = vld [vmem:[#allocation3 + $0x1b8] sm:$0xff]  ;;  %v300_v54 = vld [vmem:[#allocation3 + $0x1a0] sm:$0xff] }
  0x35   :  { %v301_v55 = vld [vmem:[#allocation3 + $0x1a8] sm:$0xff]  ;;  %v306_v56 = vld [vmem:[#allocation3 + $0x1d0] sm:$0xff]  ;;  %v307_v57 = vld [vmem:[#allocation3 + $0x1d8] sm:$0xff] }
  0x36   :  { %941 = vmatmul.f32.gmra.mxu2 %v254_v4  ;;  %1150 = vmatmul.f32.gmra.mxu3 %v255_v5  ;;  %v304_v58 = vld [vmem:[#allocation3 + $0x1c0] sm:$0xff]  ;;  %v305_v59 = vld [vmem:[#allocation3 + $0x1c8] sm:$0xff]  ;;  %v310_v60 = vld [vmem:[#allocation3 + $0x1f0] sm:$0xff] }
  0x37   :  { %v311_v61 = vld [vmem:[#allocation3 + $0x1f8] sm:$0xff]  ;;  %v308_v62 = vld [vmem:[#allocation3 + $0x1e0] sm:$0xff]  ;;  %v309_v63 = vld [vmem:[#allocation3 + $0x1e8] sm:$0xff] }
  0x38   :  { %523 = vmatmul.f32.gmra.mxu0 %v252_v6  ;;  %732 = vmatmul.f32.gmra.mxu1 %v253_v7  ;;  %v314_v0 = vld [vmem:[#allocation3 + $0x210] sm:$0xff]  ;;  %v315_v1 = vld [vmem:[#allocation3 + $0x218] sm:$0xff]  ;;  %v312_v4 = vld [vmem:[#allocation3 + $0x200] sm:$0xff] }
  0x39   :  { %v313_v5 = vld [vmem:[#allocation3 + $0x208] sm:$0xff] }
  0x3e   :  { %944 = vmatmul.f32.gmra.mxu2 %v258_v8  ;;  %1153 = vmatmul.f32.gmra.mxu3 %v259_v9 }
  0x40   :  { %526 = vmatmul.f32.gmra.mxu0 %v256_v10  ;;  %735 = vmatmul.f32.gmra.mxu1 %v257_v11  ;;  %v1599_v10 = vld [vmem:[#allocation6] sm:$0xff]  ;;  %v318_v11 = vld [vmem:[#allocation3 + $0x230] sm:$0xff] }
  0x46   :  { %947 = vmatmul.f32.gmra.mxu2 %v262_v12  ;;  %1156 = vmatmul.f32.gmra.mxu3 %v263_v13  ;;  %v319_v12 = vld [vmem:[#allocation3 + $0x238] sm:$0xff] }
  0x48   :  { %529 = vmatmul.f32.gmra.mxu0 %v260_v14  ;;  %738 = vmatmul.f32.gmra.mxu1 %v261_v15 }
  0x4e   :  { %950 = vmatmul.f32.gmra.mxu2 %v266_v16  ;;  %1159 = vmatmul.f32.gmra.mxu3 %v267_v17  ;;  %v316_v16 = vld [vmem:[#allocation3 + $0x220] sm:$0xff]  ;;  %v317_v17 = vld [vmem:[#allocation3 + $0x228] sm:$0xff] }
  0x50   :  { %532 = vmatmul.f32.gmra.mxu0 %v264_v18  ;;  %741 = vmatmul.f32.gmra.mxu1 %v265_v19 }
  0x56   :  { %953 = vmatmul.f32.gmra.mxu2 %v270_v20  ;;  %1162 = vmatmul.f32.gmra.mxu3 %v271_v21 }
  0x58   :  { %535 = vmatmul.f32.gmra.mxu0 %v268_v22  ;;  %744 = vmatmul.f32.gmra.mxu1 %v269_v23  ;;  %v1600_v23 = vld [vmem:[#allocation6 + $0x8] sm:$0xff] }
  0x5e   :  { %956 = vmatmul.f32.gmra.mxu2 %v274_v24  ;;  %1165 = vmatmul.f32.gmra.mxu3 %v275_v25  ;;  %v322_v24 = vld [vmem:[#allocation3 + $0x250] sm:$0xff]  ;;  %v323_v25 = vld [vmem:[#allocation3 + $0x258] sm:$0xff] }
  0x60   :  { %538 = vmatmul.f32.gmra.mxu0 %v272_v26  ;;  %747 = vmatmul.f32.gmra.mxu1 %v273_v27 }
  0x66   :  { %959 = vmatmul.f32.gmra.mxu2 %v278_v28  ;;  %1168 = vmatmul.f32.gmra.mxu3 %v279_v29  ;;  %v320_v29 = vld [vmem:[#allocation3 + $0x240] sm:$0xff] }
  0x68   :  { %541 = vmatmul.f32.gmra.mxu0 %v276_v30  ;;  %750 = vmatmul.f32.gmra.mxu1 %v277_v31  ;;  %v321_v30 = vld [vmem:[#allocation3 + $0x248] sm:$0xff] }
  0x6e   :  { %962 = vmatmul.f32.gmra.mxu2 %v282_v32  ;;  %1171 = vmatmul.f32.gmra.mxu3 %v283_v33 }
  0x70   :  { %544 = vmatmul.f32.gmra.mxu0 %v280_v34  ;;  %753 = vmatmul.f32.gmra.mxu1 %v281_v35 }
  0x76   :  { %965 = vmatmul.f32.gmra.mxu2 %v286_v36  ;;  %1174 = vmatmul.f32.gmra.mxu3 %v287_v37  ;;  %v1601_v36 = vld [vmem:[#allocation6 + $0x10] sm:$0xff] }
  0x77   :  { %v326_v37 = vld [vmem:[#allocation3 + $0x270] sm:$0xff] }
  0x78   :  { %547 = vmatmul.f32.gmra.mxu0 %v284_v38  ;;  %756 = vmatmul.f32.gmra.mxu1 %v285_v39  ;;  %v327_v38 = vld [vmem:[#allocation3 + $0x278] sm:$0xff] }
  0x7e   :  { %968 = vmatmul.f32.gmra.mxu2 %v290_v40  ;;  %1177 = vmatmul.f32.gmra.mxu3 %v291_v41 }
  0x80   :  { %550 = vmatmul.f32.gmra.mxu0 %v288_v42  ;;  %759 = vmatmul.f32.gmra.mxu1 %v289_v43  ;;  %v324_v42 = vld [vmem:[#allocation3 + $0x260] sm:$0xff]  ;;  %v325_v43 = vld [vmem:[#allocation3 + $0x268] sm:$0xff] }
  0x86   :  { %971 = vmatmul.f32.gmra.mxu2 %v294_v44  ;;  %1180 = vmatmul.f32.gmra.mxu3 %v295_v45 }
  0x88   :  { %553 = vmatmul.f32.gmra.mxu0 %v292_v46  ;;  %762 = vmatmul.f32.gmra.mxu1 %v293_v47 }
  0x8e   :  { %974 = vmatmul.f32.gmra.mxu2 %v298_v48  ;;  %1183 = vmatmul.f32.gmra.mxu3 %v299_v49  ;;  %v1602_v49 = vld [vmem:[#allocation6 + $0x18] sm:$0xff] }
  0x90   :  { %556 = vmatmul.f32.gmra.mxu0 %v296_v50  ;;  %765 = vmatmul.f32.gmra.mxu1 %v297_v51  ;;  %v330_v50 = vld [vmem:[#allocation3 + $0x290] sm:$0xff]  ;;  %v331_v51 = vld [vmem:[#allocation3 + $0x298] sm:$0xff] }
  0x96   :  { %977 = vmatmul.f32.gmra.mxu2 %v302_v52  ;;  %1186 = vmatmul.f32.gmra.mxu3 %v303_v53 }
  0x98   :  { %559 = vmatmul.f32.gmra.mxu0 %v300_v54  ;;  %768 = vmatmul.f32.gmra.mxu1 %v301_v55  ;;  %v328_v55 = vld [vmem:[#allocation3 + $0x280] sm:$0xff] }
  0x9e   :  { %980 = vmatmul.f32.gmra.mxu2 %v306_v56  ;;  %1189 = vmatmul.f32.gmra.mxu3 %v307_v57  ;;  %v329_v56 = vld [vmem:[#allocation3 + $0x288] sm:$0xff] }
  0xa0   :  { %562 = vmatmul.f32.gmra.mxu0 %v304_v58  ;;  %771 = vmatmul.f32.gmra.mxu1 %v305_v59 }
  0xa6   :  { %983 = vmatmul.f32.gmra.mxu2 %v310_v60  ;;  %1192 = vmatmul.f32.gmra.mxu3 %v311_v61 }
  0xa8   :  { %565 = vmatmul.f32.gmra.mxu0 %v308_v62  ;;  %774 = vmatmul.f32.gmra.mxu1 %v309_v63  ;;  %v1603_v62 = vld [vmem:[#allocation6 + $0x20] sm:$0xff]  ;;  %v334_v63 = vld [vmem:[#allocation3 + $0x2b0] sm:$0xff] }
  0xad   :  { %v521_v2 = vpop.f32.mrf.mxu0  ;;  %v730_v3 = vpop.f32.mrf.mxu1 }
  0xae   :  { %986 = vmatmul.f32.gmra.mxu2 %v314_v0  ;;  %v731_v6 = vadd.f32 %v730_v3, %v521_v2  ;;  %1195 = vmatmul.f32.gmra.mxu3 %v315_v1  ;;  %v335_v0 = vld [vmem:[#allocation3 + $0x2b8] sm:$0xff] }
  0xb0   :  { %568 = vmatmul.f32.gmra.mxu0 %v312_v4  ;;  %777 = vmatmul.f32.gmra.mxu1 %v313_v5  ;;  %v332_v4 = vld [vmem:[#allocation3 + $0x2a0] sm:$0xff]  ;;  %v333_v5 = vld [vmem:[#allocation3 + $0x2a8] sm:$0xff] }
  0xb1   :  { %v939_v7 = vpop.f32.mrf.mxu2  ;;  %v1148_v8 = vpop.f32.mrf.mxu3 }
  0xb2   :  { %v940_v9 = vadd.f32 %v939_v7, %v731_v6 }
  0xb4   :  { %v1149_v13 = vadd.f32 %v1148_v8, %v940_v9 }
  0xb5   :  { %v524_v14 = vpop.f32.mrf.mxu0  ;;  %v733_v15 = vpop.f32.mrf.mxu1 }
  0xb6   :  { %1535 = vst [vmem:[#allocation8] sm:$0xff] %v1149_v13  ;;  %v1663_v18 = vadd.f32 %v1599_v10, %v1149_v13  ;;  %989 = vmatmul.f32.gmra.mxu2 %v318_v11  ;;  %v734_v19 = vadd.f32 %v733_v15, %v524_v14  ;;  %1198 = vmatmul.f32.gmra.mxu3 %v319_v12  ;;  %v1604_v11 = vld [vmem:[#allocation6 + $0x28] sm:$0xff]  ;;  %v338_v12 = vld [vmem:[#allocation3 + $0x2d0] sm:$0xff]  ;;  %v339_v13 = vld [vmem:[#allocation3 + $0x2d8] sm:$0xff] }
  0xb8   :  { %1727 = vst [vmem:[#allocation9] sm:$0xff] %v1663_v18  ;;  %571 = vmatmul.f32.gmra.mxu0 %v316_v16  ;;  %780 = vmatmul.f32.gmra.mxu1 %v317_v17  ;;  %v336_v17 = vld [vmem:[#allocation3 + $0x2c0] sm:$0xff]  ;;  %v337_v18 = vld [vmem:[#allocation3 + $0x2c8] sm:$0xff] }
  0xb9   :  { %v942_v20 = vpop.f32.mrf.mxu2  ;;  %v1151_v21 = vpop.f32.mrf.mxu3 }
  0xba   :  { %v943_v22 = vadd.f32 %v942_v20, %v734_v19 }
  0xbc   :  { %v1152_v26 = vadd.f32 %v1151_v21, %v943_v22 }
  0xbd   :  { %v527_v27 = vpop.f32.mrf.mxu0  ;;  %v736_v28 = vpop.f32.mrf.mxu1 }
  0xbe   :  { %1536 = vst [vmem:[#allocation8 + $0x8] sm:$0xff] %v1152_v26  ;;  %v1664_v31 = vadd.f32 %v1600_v23, %v1152_v26  ;;  %992 = vmatmul.f32.gmra.mxu2 %v322_v24  ;;  %v737_v32 = vadd.f32 %v736_v28, %v527_v27  ;;  %1201 = vmatmul.f32.gmra.mxu3 %v323_v25  ;;  %v1605_v24 = vld [vmem:[#allocation6 + $0x30] sm:$0xff]  ;;  %v343_v26 = vld [vmem:[#allocation3 + $0x2f8] sm:$0xff] }
  0xbf   :  { %v342_v25 = vld [vmem:[#allocation3 + $0x2f0] sm:$0xff] }
  0xc0   :  { %1728 = vst [vmem:[#allocation9 + $0x8] sm:$0xff] %v1664_v31  ;;  %574 = vmatmul.f32.gmra.mxu0 %v320_v29  ;;  %783 = vmatmul.f32.gmra.mxu1 %v321_v30  ;;  %v340_v30 = vld [vmem:[#allocation3 + $0x2e0] sm:$0xff]  ;;  %v341_v31 = vld [vmem:[#allocation3 + $0x2e8] sm:$0xff] }
  0xc1   :  { %v945_v33 = vpop.f32.mrf.mxu2  ;;  %v1154_v34 = vpop.f32.mrf.mxu3 }
  0xc2   :  { %v946_v35 = vadd.f32 %v945_v33, %v737_v32 }
  0xc4   :  { %v1155_v39 = vadd.f32 %v1154_v34, %v946_v35 }
  0xc5   :  { %v530_v40 = vpop.f32.mrf.mxu0  ;;  %v739_v41 = vpop.f32.mrf.mxu1 }
  0xc6   :  { %1537 = vst [vmem:[#allocation8 + $0x10] sm:$0xff] %v1155_v39  ;;  %v1665_v44 = vadd.f32 %v1601_v36, %v1155_v39  ;;  %995 = vmatmul.f32.gmra.mxu2 %v326_v37  ;;  %v740_v45 = vadd.f32 %v739_v41, %v530_v40  ;;  %1204 = vmatmul.f32.gmra.mxu3 %v327_v38  ;;  %v1606_v37 = vld [vmem:[#allocation6 + $0x38] sm:$0xff]  ;;  %v346_v38 = vld [vmem:[#allocation3 + $0x310] sm:$0xff] }
  0xc7   :  { %v347_v39 = vld [vmem:[#allocation3 + $0x318] sm:$0xff] }
  0xc8   :  { %1729 = vst [vmem:[#allocation9 + $0x10] sm:$0xff] %v1665_v44  ;;  %577 = vmatmul.f32.gmra.mxu0 %v324_v42  ;;  %786 = vmatmul.f32.gmra.mxu1 %v325_v43  ;;  %v344_v43 = vld [vmem:[#allocation3 + $0x300] sm:$0xff]  ;;  %v345_v44 = vld [vmem:[#allocation3 + $0x308] sm:$0xff] }
  0xc9   :  { %v948_v46 = vpop.f32.mrf.mxu2  ;;  %v1157_v47 = vpop.f32.mrf.mxu3 }
  0xca   :  { %v949_v48 = vadd.f32 %v948_v46, %v740_v45 }
  0xcc   :  { %v1158_v52 = vadd.f32 %v1157_v47, %v949_v48 }
  0xcd   :  { %v533_v53 = vpop.f32.mrf.mxu0  ;;  %v742_v54 = vpop.f32.mrf.mxu1 }
  0xce   :  { %1538 = vst [vmem:[#allocation8 + $0x18] sm:$0xff] %v1158_v52  ;;  %v1666_v57 = vadd.f32 %v1602_v49, %v1158_v52  ;;  %998 = vmatmul.f32.gmra.mxu2 %v330_v50  ;;  %v743_v58 = vadd.f32 %v742_v54, %v533_v53  ;;  %1207 = vmatmul.f32.gmra.mxu3 %v331_v51  ;;  %v1607_v50 = vld [vmem:[#allocation6 + $0x40] sm:$0xff]  ;;  %v350_v51 = vld [vmem:[#allocation3 + $0x330] sm:$0xff]  ;;  %v351_v52 = vld [vmem:[#allocation3 + $0x338] sm:$0xff] }
  0xd0   :  { %1730 = vst [vmem:[#allocation9 + $0x18] sm:$0xff] %v1666_v57  ;;  %580 = vmatmul.f32.gmra.mxu0 %v328_v55  ;;  %789 = vmatmul.f32.gmra.mxu1 %v329_v56  ;;  %v348_v56 = vld [vmem:[#allocation3 + $0x320] sm:$0xff]  ;;  %v349_v57 = vld [vmem:[#allocation3 + $0x328] sm:$0xff] }
  0xd1   :  { %v951_v59 = vpop.f32.mrf.mxu2  ;;  %v1160_v60 = vpop.f32.mrf.mxu3 }
  0xd2   :  { %v952_v61 = vadd.f32 %v951_v59, %v743_v58 }
  0xd4   :  { %v1161_v1 = vadd.f32 %v1160_v60, %v952_v61 }
  0xd5   :  { %v536_v2 = vpop.f32.mrf.mxu0  ;;  %v745_v3 = vpop.f32.mrf.mxu1 }
  0xd6   :  { %1539 = vst [vmem:[#allocation8 + $0x20] sm:$0xff] %v1161_v1  ;;  %v1667_v6 = vadd.f32 %v1603_v62, %v1161_v1  ;;  %1001 = vmatmul.f32.gmra.mxu2 %v334_v63  ;;  %v746_v7 = vadd.f32 %v745_v3, %v536_v2  ;;  %1210 = vmatmul.f32.gmra.mxu3 %v335_v0  ;;  %v1608_v63 = vld [vmem:[#allocation6 + $0x48] sm:$0xff]  ;;  %v354_v0 = vld [vmem:[#allocation3 + $0x350] sm:$0xff]  ;;  %v355_v1 = vld [vmem:[#allocation3 + $0x358] sm:$0xff] }
  0xd8   :  { %1731 = vst [vmem:[#allocation9 + $0x20] sm:$0xff] %v1667_v6  ;;  %583 = vmatmul.f32.gmra.mxu0 %v332_v4  ;;  %792 = vmatmul.f32.gmra.mxu1 %v333_v5  ;;  %v352_v5 = vld [vmem:[#allocation3 + $0x340] sm:$0xff]  ;;  %v353_v6 = vld [vmem:[#allocation3 + $0x348] sm:$0xff] }
  0xd9   :  { %v954_v8 = vpop.f32.mrf.mxu2  ;;  %v1163_v9 = vpop.f32.mrf.mxu3 }
  0xda   :  { %v955_v10 = vadd.f32 %v954_v8, %v746_v7 }
  0xdc   :  { %v1164_v14 = vadd.f32 %v1163_v9, %v955_v10 }
  0xdd   :  { %v539_v15 = vpop.f32.mrf.mxu0  ;;  %v748_v16 = vpop.f32.mrf.mxu1 }
  0xde   :  { %1540 = vst [vmem:[#allocation8 + $0x28] sm:$0xff] %v1164_v14  ;;  %v1668_v19 = vadd.f32 %v1604_v11, %v1164_v14  ;;  %1004 = vmatmul.f32.gmra.mxu2 %v338_v12  ;;  %v749_v20 = vadd.f32 %v748_v16, %v539_v15  ;;  %1213 = vmatmul.f32.gmra.mxu3 %v339_v13  ;;  %v1609_v12 = vld [vmem:[#allocation6 + $0x50] sm:$0xff]  ;;  %v359_v14 = vld [vmem:[#allocation3 + $0x378] sm:$0xff] }
  0xdf   :  { %v358_v13 = vld [vmem:[#allocation3 + $0x370] sm:$0xff] }
  0xe0   :  { %1732 = vst [vmem:[#allocation9 + $0x28] sm:$0xff] %v1668_v19  ;;  %586 = vmatmul.f32.gmra.mxu0 %v336_v17  ;;  %795 = vmatmul.f32.gmra.mxu1 %v337_v18  ;;  %v356_v18 = vld [vmem:[#allocation3 + $0x360] sm:$0xff]  ;;  %v357_v19 = vld [vmem:[#allocation3 + $0x368] sm:$0xff] }
  0xe1   :  { %v957_v21 = vpop.f32.mrf.mxu2  ;;  %v1166_v22 = vpop.f32.mrf.mxu3 }
  0xe2   :  { %v958_v23 = vadd.f32 %v957_v21, %v749_v20 }
  0xe4   :  { %v1167_v27 = vadd.f32 %v1166_v22, %v958_v23 }
  0xe5   :  { %v542_v28 = vpop.f32.mrf.mxu0  ;;  %v751_v29 = vpop.f32.mrf.mxu1 }
  0xe6   :  { %1541 = vst [vmem:[#allocation8 + $0x30] sm:$0xff] %v1167_v27  ;;  %v1669_v32 = vadd.f32 %v1605_v24, %v1167_v27  ;;  %1007 = vmatmul.f32.gmra.mxu2 %v342_v25  ;;  %v752_v33 = vadd.f32 %v751_v29, %v542_v28  ;;  %1216 = vmatmul.f32.gmra.mxu3 %v343_v26  ;;  %v1610_v25 = vld [vmem:[#allocation6 + $0x58] sm:$0xff]  ;;  %v362_v26 = vld [vmem:[#allocation3 + $0x390] sm:$0xff] }
  0xe7   :  { %v363_v27 = vld [vmem:[#allocation3 + $0x398] sm:$0xff] }
  0xe8   :  { %1733 = vst [vmem:[#allocation9 + $0x30] sm:$0xff] %v1669_v32  ;;  %589 = vmatmul.f32.gmra.mxu0 %v340_v30  ;;  %798 = vmatmul.f32.gmra.mxu1 %v341_v31  ;;  %v360_v31 = vld [vmem:[#allocation3 + $0x380] sm:$0xff]  ;;  %v361_v32 = vld [vmem:[#allocation3 + $0x388] sm:$0xff] }
  0xe9   :  { %v960_v34 = vpop.f32.mrf.mxu2  ;;  %v1169_v35 = vpop.f32.mrf.mxu3 }
  0xea   :  { %v961_v36 = vadd.f32 %v960_v34, %v752_v33 }
  0xec   :  { %v1170_v40 = vadd.f32 %v1169_v35, %v961_v36 }
  0xed   :  { %v545_v41 = vpop.f32.mrf.mxu0  ;;  %v754_v42 = vpop.f32.mrf.mxu1 }
  0xee   :  { %1542 = vst [vmem:[#allocation8 + $0x38] sm:$0xff] %v1170_v40  ;;  %v1670_v45 = vadd.f32 %v1606_v37, %v1170_v40  ;;  %1010 = vmatmul.f32.gmra.mxu2 %v346_v38  ;;  %v755_v46 = vadd.f32 %v754_v42, %v545_v41  ;;  %1219 = vmatmul.f32.gmra.mxu3 %v347_v39  ;;  %v1611_v38 = vld [vmem:[#allocation6 + $0x60] sm:$0xff]  ;;  %v366_v39 = vld [vmem:[#allocation3 + $0x3b0] sm:$0xff]  ;;  %v367_v40 = vld [vmem:[#allocation3 + $0x3b8] sm:$0xff] }
  0xf0   :  { %1734 = vst [vmem:[#allocation9 + $0x38] sm:$0xff] %v1670_v45  ;;  %592 = vmatmul.f32.gmra.mxu0 %v344_v43  ;;  %801 = vmatmul.f32.gmra.mxu1 %v345_v44  ;;  %v364_v44 = vld [vmem:[#allocation3 + $0x3a0] sm:$0xff]  ;;  %v365_v45 = vld [vmem:[#allocation3 + $0x3a8] sm:$0xff] }
  0xf1   :  { %v963_v47 = vpop.f32.mrf.mxu2  ;;  %v1172_v48 = vpop.f32.mrf.mxu3 }
  0xf2   :  { %v964_v49 = vadd.f32 %v963_v47, %v755_v46 }
  0xf4   :  { %v1173_v53 = vadd.f32 %v1172_v48, %v964_v49 }
  0xf5   :  { %v548_v54 = vpop.f32.mrf.mxu0  ;;  %v757_v55 = vpop.f32.mrf.mxu1 }
  0xf6   :  { %1543 = vst [vmem:[#allocation8 + $0x40] sm:$0xff] %v1173_v53  ;;  %v1671_v58 = vadd.f32 %v1607_v50, %v1173_v53  ;;  %1013 = vmatmul.f32.gmra.mxu2 %v350_v51  ;;  %v758_v59 = vadd.f32 %v757_v55, %v548_v54  ;;  %1222 = vmatmul.f32.gmra.mxu3 %v351_v52  ;;  %v1612_v51 = vld [vmem:[#allocation6 + $0x68] sm:$0xff]  ;;  %v370_v52 = vld [vmem:[#allocation3 + $0x3d0] sm:$0xff]  ;;  %v371_v53 = vld [vmem:[#allocation3 + $0x3d8] sm:$0xff] }
  0xf8   :  { %1735 = vst [vmem:[#allocation9 + $0x40] sm:$0xff] %v1671_v58  ;;  %595 = vmatmul.f32.gmra.mxu0 %v348_v56  ;;  %804 = vmatmul.f32.gmra.mxu1 %v349_v57  ;;  %v368_v57 = vld [vmem:[#allocation3 + $0x3c0] sm:$0xff]  ;;  %v369_v58 = vld [vmem:[#allocation3 + $0x3c8] sm:$0xff] }
  0xf9   :  { %v966_v60 = vpop.f32.mrf.mxu2  ;;  %v1175_v61 = vpop.f32.mrf.mxu3 }
  0xfa   :  { %v967_v62 = vadd.f32 %v966_v60, %v758_v59 }
  0xfc   :  { %v1176_v2 = vadd.f32 %v1175_v61, %v967_v62 }
  0xfd   :  { %v551_v3 = vpop.f32.mrf.mxu0  ;;  %v760_v4 = vpop.f32.mrf.mxu1 }
  0xfe   :  { %1544 = vst [vmem:[#allocation8 + $0x48] sm:$0xff] %v1176_v2  ;;  %v1672_v7 = vadd.f32 %v1608_v63, %v1176_v2  ;;  %1016 = vmatmul.f32.gmra.mxu2 %v354_v0  ;;  %v761_v8 = vadd.f32 %v760_v4, %v551_v3  ;;  %1225 = vmatmul.f32.gmra.mxu3 %v355_v1  ;;  %v1613_v0 = vld [vmem:[#allocation6 + $0x70] sm:$0xff]  ;;  %v375_v2 = vld [vmem:[#allocation3 + $0x3f8] sm:$0xff] }
  0xff   :  { %v374_v1 = vld [vmem:[#allocation3 + $0x3f0] sm:$0xff] }
 0x100   :  { %1736 = vst [vmem:[#allocation9 + $0x48] sm:$0xff] %v1672_v7  ;;  %598 = vmatmul.f32.gmra.mxu0 %v352_v5  ;;  %807 = vmatmul.f32.gmra.mxu1 %v353_v6  ;;  %v372_v6 = vld [vmem:[#allocation3 + $0x3e0] sm:$0xff]  ;;  %v373_v7 = vld [vmem:[#allocation3 + $0x3e8] sm:$0xff] }
 0x101   :  { %v969_v9 = vpop.f32.mrf.mxu2  ;;  %v1178_v10 = vpop.f32.mrf.mxu3 }
 0x102   :  { %v970_v11 = vadd.f32 %v969_v9, %v761_v8 }
 0x104   :  { %v1179_v15 = vadd.f32 %v1178_v10, %v970_v11 }
 0x105   :  { %v554_v16 = vpop.f32.mrf.mxu0  ;;  %v763_v17 = vpop.f32.mrf.mxu1 }
 0x106   :  { %1545 = vst [vmem:[#allocation8 + $0x50] sm:$0xff] %v1179_v15  ;;  %v1673_v20 = vadd.f32 %v1609_v12, %v1179_v15  ;;  %1019 = vmatmul.f32.gmra.mxu2 %v358_v13  ;;  %v764_v21 = vadd.f32 %v763_v17, %v554_v16  ;;  %1228 = vmatmul.f32.gmra.mxu3 %v359_v14  ;;  %v1614_v13 = vld [vmem:[#allocation6 + $0x78] sm:$0xff]  ;;  %v378_v14 = vld [vmem:[#allocation3 + $0x410] sm:$0xff] }
 0x107   :  { %v379_v15 = vld [vmem:[#allocation3 + $0x418] sm:$0xff] }
 0x108   :  { %1737 = vst [vmem:[#allocation9 + $0x50] sm:$0xff] %v1673_v20  ;;  %601 = vmatmul.f32.gmra.mxu0 %v356_v18  ;;  %810 = vmatmul.f32.gmra.mxu1 %v357_v19  ;;  %v376_v19 = vld [vmem:[#allocation3 + $0x400] sm:$0xff]  ;;  %v377_v20 = vld [vmem:[#allocation3 + $0x408] sm:$0xff] }
 0x109   :  { %v972_v22 = vpop.f32.mrf.mxu2  ;;  %v1181_v23 = vpop.f32.mrf.mxu3 }
 0x10a   :  { %v973_v24 = vadd.f32 %v972_v22, %v764_v21 }
 0x10c   :  { %v1182_v28 = vadd.f32 %v1181_v23, %v973_v24 }
 0x10d   :  { %v557_v29 = vpop.f32.mrf.mxu0  ;;  %v766_v30 = vpop.f32.mrf.mxu1 }
 0x10e   :  { %1546 = vst [vmem:[#allocation8 + $0x58] sm:$0xff] %v1182_v28  ;;  %v1674_v33 = vadd.f32 %v1610_v25, %v1182_v28  ;;  %1022 = vmatmul.f32.gmra.mxu2 %v362_v26  ;;  %v767_v34 = vadd.f32 %v766_v30, %v557_v29  ;;  %1231 = vmatmul.f32.gmra.mxu3 %v363_v27  ;;  %v1615_v26 = vld [vmem:[#allocation6 + $0x80] sm:$0xff]  ;;  %v382_v27 = vld [vmem:[#allocation3 + $0x430] sm:$0xff]  ;;  %v383_v28 = vld [vmem:[#allocation3 + $0x438] sm:$0xff] }
 0x110   :  { %1738 = vst [vmem:[#allocation9 + $0x58] sm:$0xff] %v1674_v33  ;;  %604 = vmatmul.f32.gmra.mxu0 %v360_v31  ;;  %813 = vmatmul.f32.gmra.mxu1 %v361_v32  ;;  %v380_v32 = vld [vmem:[#allocation3 + $0x420] sm:$0xff]  ;;  %v381_v33 = vld [vmem:[#allocation3 + $0x428] sm:$0xff] }
 0x111   :  { %v975_v35 = vpop.f32.mrf.mxu2  ;;  %v1184_v36 = vpop.f32.mrf.mxu3 }
 0x112   :  { %v976_v37 = vadd.f32 %v975_v35, %v767_v34 }
 0x114   :  { %v1185_v41 = vadd.f32 %v1184_v36, %v976_v37 }
 0x115   :  { %v560_v42 = vpop.f32.mrf.mxu0  ;;  %v769_v43 = vpop.f32.mrf.mxu1 }
 0x116   :  { %1547 = vst [vmem:[#allocation8 + $0x60] sm:$0xff] %v1185_v41  ;;  %v1675_v46 = vadd.f32 %v1611_v38, %v1185_v41  ;;  %1025 = vmatmul.f32.gmra.mxu2 %v366_v39  ;;  %v770_v47 = vadd.f32 %v769_v43, %v560_v42  ;;  %1234 = vmatmul.f32.gmra.mxu3 %v367_v40  ;;  %v1616_v39 = vld [vmem:[#allocation6 + $0x88] sm:$0xff]  ;;  %v386_v40 = vld [vmem:[#allocation3 + $0x450] sm:$0xff]  ;;  %v387_v41 = vld [vmem:[#allocation3 + $0x458] sm:$0xff] }
 0x118   :  { %1739 = vst [vmem:[#allocation9 + $0x60] sm:$0xff] %v1675_v46  ;;  %607 = vmatmul.f32.gmra.mxu0 %v364_v44  ;;  %816 = vmatmul.f32.gmra.mxu1 %v365_v45  ;;  %v384_v45 = vld [vmem:[#allocation3 + $0x440] sm:$0xff]  ;;  %v385_v46 = vld [vmem:[#allocation3 + $0x448] sm:$0xff] }
 0x119   :  { %v978_v48 = vpop.f32.mrf.mxu2  ;;  %v1187_v49 = vpop.f32.mrf.mxu3 }
 0x11a   :  { %v979_v50 = vadd.f32 %v978_v48, %v770_v47 }
 0x11c   :  { %v1188_v54 = vadd.f32 %v1187_v49, %v979_v50 }
 0x11d   :  { %v563_v55 = vpop.f32.mrf.mxu0  ;;  %v772_v56 = vpop.f32.mrf.mxu1 }
 0x11e   :  { %1548 = vst [vmem:[#allocation8 + $0x68] sm:$0xff] %v1188_v54  ;;  %v1676_v59 = vadd.f32 %v1612_v51, %v1188_v54  ;;  %1028 = vmatmul.f32.gmra.mxu2 %v370_v52  ;;  %v773_v60 = vadd.f32 %v772_v56, %v563_v55  ;;  %1237 = vmatmul.f32.gmra.mxu3 %v371_v53  ;;  %v1617_v52 = vld [vmem:[#allocation6 + $0x90] sm:$0xff]  ;;  %v391_v54 = vld [vmem:[#allocation3 + $0x478] sm:$0xff] }
 0x11f   :  { %v390_v53 = vld [vmem:[#allocation3 + $0x470] sm:$0xff] }
 0x120   :  { %1740 = vst [vmem:[#allocation9 + $0x68] sm:$0xff] %v1676_v59  ;;  %610 = vmatmul.f32.gmra.mxu0 %v368_v57  ;;  %819 = vmatmul.f32.gmra.mxu1 %v369_v58  ;;  %v388_v58 = vld [vmem:[#allocation3 + $0x460] sm:$0xff]  ;;  %v389_v59 = vld [vmem:[#allocation3 + $0x468] sm:$0xff] }
 0x121   :  { %v981_v61 = vpop.f32.mrf.mxu2  ;;  %v1190_v62 = vpop.f32.mrf.mxu3 }
 0x122   :  { %v982_v63 = vadd.f32 %v981_v61, %v773_v60 }
 0x124   :  { %v1191_v3 = vadd.f32 %v1190_v62, %v982_v63 }
 0x125   :  { %v566_v4 = vpop.f32.mrf.mxu0  ;;  %v775_v5 = vpop.f32.mrf.mxu1 }
 0x126   :  { %1549 = vst [vmem:[#allocation8 + $0x70] sm:$0xff] %v1191_v3  ;;  %v1677_v8 = vadd.f32 %v1613_v0, %v1191_v3  ;;  %1031 = vmatmul.f32.gmra.mxu2 %v374_v1  ;;  %v776_v9 = vadd.f32 %v775_v5, %v566_v4  ;;  %1240 = vmatmul.f32.gmra.mxu3 %v375_v2  ;;  %v1618_v1 = vld [vmem:[#allocation6 + $0x98] sm:$0xff]  ;;  %v394_v2 = vld [vmem:[#allocation3 + $0x490] sm:$0xff] }
 0x127   :  { %v395_v3 = vld [vmem:[#allocation3 + $0x498] sm:$0xff] }
 0x128   :  { %1741 = vst [vmem:[#allocation9 + $0x70] sm:$0xff] %v1677_v8  ;;  %613 = vmatmul.f32.gmra.mxu0 %v372_v6  ;;  %822 = vmatmul.f32.gmra.mxu1 %v373_v7  ;;  %v392_v7 = vld [vmem:[#allocation3 + $0x480] sm:$0xff]  ;;  %v393_v8 = vld [vmem:[#allocation3 + $0x488] sm:$0xff] }
 0x129   :  { %v984_v10 = vpop.f32.mrf.mxu2  ;;  %v1193_v11 = vpop.f32.mrf.mxu3 }
 0x12a   :  { %v985_v12 = vadd.f32 %v984_v10, %v776_v9 }
 0x12c   :  { %v1194_v16 = vadd.f32 %v1193_v11, %v985_v12 }
 0x12d   :  { %v569_v17 = vpop.f32.mrf.mxu0  ;;  %v778_v18 = vpop.f32.mrf.mxu1 }
 0x12e   :  { %1550 = vst [vmem:[#allocation8 + $0x78] sm:$0xff] %v1194_v16  ;;  %v1678_v21 = vadd.f32 %v1614_v13, %v1194_v16  ;;  %1034 = vmatmul.f32.gmra.mxu2 %v378_v14  ;;  %v779_v22 = vadd.f32 %v778_v18, %v569_v17  ;;  %1243 = vmatmul.f32.gmra.mxu3 %v379_v15  ;;  %v1619_v14 = vld [vmem:[#allocation6 + $0xa0] sm:$0xff]  ;;  %v398_v15 = vld [vmem:[#allocation3 + $0x4b0] sm:$0xff]  ;;  %v399_v16 = vld [vmem:[#allocation3 + $0x4b8] sm:$0xff] }
 0x130   :  { %1742 = vst [vmem:[#allocation9 + $0x78] sm:$0xff] %v1678_v21  ;;  %616 = vmatmul.f32.gmra.mxu0 %v376_v19  ;;  %825 = vmatmul.f32.gmra.mxu1 %v377_v20  ;;  %v396_v20 = vld [vmem:[#allocation3 + $0x4a0] sm:$0xff]  ;;  %v397_v21 = vld [vmem:[#allocation3 + $0x4a8] sm:$0xff] }
 0x131   :  { %v987_v23 = vpop.f32.mrf.mxu2  ;;  %v1196_v24 = vpop.f32.mrf.mxu3 }
 0x132   :  { %v988_v25 = vadd.f32 %v987_v23, %v779_v22 }
 0x134   :  { %v1197_v29 = vadd.f32 %v1196_v24, %v988_v25 }
 0x135   :  { %v572_v30 = vpop.f32.mrf.mxu0  ;;  %v781_v31 = vpop.f32.mrf.mxu1 }
 0x136   :  { %1551 = vst [vmem:[#allocation8 + $0x80] sm:$0xff] %v1197_v29  ;;  %v1679_v34 = vadd.f32 %v1615_v26, %v1197_v29  ;;  %1037 = vmatmul.f32.gmra.mxu2 %v382_v27  ;;  %v782_v35 = vadd.f32 %v781_v31, %v572_v30  ;;  %1246 = vmatmul.f32.gmra.mxu3 %v383_v28  ;;  %v1620_v27 = vld [vmem:[#allocation6 + $0xa8] sm:$0xff]  ;;  %v402_v28 = vld [vmem:[#allocation3 + $0x4d0] sm:$0xff]  ;;  %v403_v29 = vld [vmem:[#allocation3 + $0x4d8] sm:$0xff] }
 0x138   :  { %1743 = vst [vmem:[#allocation9 + $0x80] sm:$0xff] %v1679_v34  ;;  %619 = vmatmul.f32.gmra.mxu0 %v380_v32  ;;  %828 = vmatmul.f32.gmra.mxu1 %v381_v33  ;;  %v400_v33 = vld [vmem:[#allocation3 + $0x4c0] sm:$0xff]  ;;  %v401_v34 = vld [vmem:[#allocation3 + $0x4c8] sm:$0xff] }
 0x139   :  { %v990_v36 = vpop.f32.mrf.mxu2  ;;  %v1199_v37 = vpop.f32.mrf.mxu3 }
 0x13a   :  { %v991_v38 = vadd.f32 %v990_v36, %v782_v35 }
 0x13c   :  { %v1200_v42 = vadd.f32 %v1199_v37, %v991_v38 }
 0x13d   :  { %v575_v43 = vpop.f32.mrf.mxu0  ;;  %v784_v44 = vpop.f32.mrf.mxu1 }
 0x13e   :  { %1552 = vst [vmem:[#allocation8 + $0x88] sm:$0xff] %v1200_v42  ;;  %v1680_v47 = vadd.f32 %v1616_v39, %v1200_v42  ;;  %1040 = vmatmul.f32.gmra.mxu2 %v386_v40  ;;  %v785_v48 = vadd.f32 %v784_v44, %v575_v43  ;;  %1249 = vmatmul.f32.gmra.mxu3 %v387_v41  ;;  %v1621_v40 = vld [vmem:[#allocation6 + $0xb0] sm:$0xff]  ;;  %v407_v42 = vld [vmem:[#allocation3 + $0x4f8] sm:$0xff] }
 0x13f   :  { %v406_v41 = vld [vmem:[#allocation3 + $0x4f0] sm:$0xff] }
 0x140   :  { %1744 = vst [vmem:[#allocation9 + $0x88] sm:$0xff] %v1680_v47  ;;  %622 = vmatmul.f32.gmra.mxu0 %v384_v45  ;;  %831 = vmatmul.f32.gmra.mxu1 %v385_v46  ;;  %v404_v46 = vld [vmem:[#allocation3 + $0x4e0] sm:$0xff]  ;;  %v405_v47 = vld [vmem:[#allocation3 + $0x4e8] sm:$0xff] }
 0x141   :  { %v993_v49 = vpop.f32.mrf.mxu2  ;;  %v1202_v50 = vpop.f32.mrf.mxu3 }
 0x142   :  { %v994_v51 = vadd.f32 %v993_v49, %v785_v48 }
 0x144   :  { %v1203_v55 = vadd.f32 %v1202_v50, %v994_v51 }
 0x145   :  { %v578_v56 = vpop.f32.mrf.mxu0  ;;  %v787_v57 = vpop.f32.mrf.mxu1 }
 0x146   :  { %1553 = vst [vmem:[#allocation8 + $0x90] sm:$0xff] %v1203_v55  ;;  %v1681_v60 = vadd.f32 %v1617_v52, %v1203_v55  ;;  %1043 = vmatmul.f32.gmra.mxu2 %v390_v53  ;;  %v788_v61 = vadd.f32 %v787_v57, %v578_v56  ;;  %1252 = vmatmul.f32.gmra.mxu3 %v391_v54  ;;  %v1622_v53 = vld [vmem:[#allocation6 + $0xb8] sm:$0xff]  ;;  %v410_v54 = vld [vmem:[#allocation3 + $0x510] sm:$0xff] }
 0x147   :  { %v411_v55 = vld [vmem:[#allocation3 + $0x518] sm:$0xff] }
 0x148   :  { %1745 = vst [vmem:[#allocation9 + $0x90] sm:$0xff] %v1681_v60  ;;  %625 = vmatmul.f32.gmra.mxu0 %v388_v58  ;;  %834 = vmatmul.f32.gmra.mxu1 %v389_v59  ;;  %v408_v59 = vld [vmem:[#allocation3 + $0x500] sm:$0xff]  ;;  %v409_v60 = vld [vmem:[#allocation3 + $0x508] sm:$0xff] }
 0x149   :  { %v996_v62 = vpop.f32.mrf.mxu2  ;;  %v1205_v63 = vpop.f32.mrf.mxu3 }
 0x14a   :  { %v997_v0 = vadd.f32 %v996_v62, %v788_v61 }
 0x14c   :  { %v1206_v4 = vadd.f32 %v1205_v63, %v997_v0 }
 0x14d   :  { %v581_v5 = vpop.f32.mrf.mxu0  ;;  %v790_v6 = vpop.f32.mrf.mxu1 }
 0x14e   :  { %1554 = vst [vmem:[#allocation8 + $0x98] sm:$0xff] %v1206_v4  ;;  %v1682_v9 = vadd.f32 %v1618_v1, %v1206_v4  ;;  %1046 = vmatmul.f32.gmra.mxu2 %v394_v2  ;;  %v791_v10 = vadd.f32 %v790_v6, %v581_v5  ;;  %1255 = vmatmul.f32.gmra.mxu3 %v395_v3  ;;  %v1623_v2 = vld [vmem:[#allocation6 + $0xc0] sm:$0xff]  ;;  %v414_v3 = vld [vmem:[#allocation3 + $0x530] sm:$0xff]  ;;  %v415_v4 = vld [vmem:[#allocation3 + $0x538] sm:$0xff] }
 0x150   :  { %1746 = vst [vmem:[#allocation9 + $0x98] sm:$0xff] %v1682_v9  ;;  %628 = vmatmul.f32.gmra.mxu0 %v392_v7  ;;  %837 = vmatmul.f32.gmra.mxu1 %v393_v8  ;;  %v412_v8 = vld [vmem:[#allocation3 + $0x520] sm:$0xff]  ;;  %v413_v9 = vld [vmem:[#allocation3 + $0x528] sm:$0xff] }
 0x151   :  { %v999_v11 = vpop.f32.mrf.mxu2  ;;  %v1208_v12 = vpop.f32.mrf.mxu3 }
 0x152   :  { %v1000_v13 = vadd.f32 %v999_v11, %v791_v10 }
 0x154   :  { %v1209_v17 = vadd.f32 %v1208_v12, %v1000_v13 }
 0x155   :  { %v584_v18 = vpop.f32.mrf.mxu0  ;;  %v793_v19 = vpop.f32.mrf.mxu1 }
 0x156   :  { %1555 = vst [vmem:[#allocation8 + $0xa0] sm:$0xff] %v1209_v17  ;;  %v1683_v22 = vadd.f32 %v1619_v14, %v1209_v17  ;;  %1049 = vmatmul.f32.gmra.mxu2 %v398_v15  ;;  %v794_v23 = vadd.f32 %v793_v19, %v584_v18  ;;  %1258 = vmatmul.f32.gmra.mxu3 %v399_v16  ;;  %v1624_v15 = vld [vmem:[#allocation6 + $0xc8] sm:$0xff]  ;;  %v418_v16 = vld [vmem:[#allocation3 + $0x550] sm:$0xff]  ;;  %v419_v17 = vld [vmem:[#allocation3 + $0x558] sm:$0xff] }
 0x158   :  { %1747 = vst [vmem:[#allocation9 + $0xa0] sm:$0xff] %v1683_v22  ;;  %631 = vmatmul.f32.gmra.mxu0 %v396_v20  ;;  %840 = vmatmul.f32.gmra.mxu1 %v397_v21  ;;  %v416_v21 = vld [vmem:[#allocation3 + $0x540] sm:$0xff]  ;;  %v417_v22 = vld [vmem:[#allocation3 + $0x548] sm:$0xff] }
 0x159   :  { %v1002_v24 = vpop.f32.mrf.mxu2  ;;  %v1211_v25 = vpop.f32.mrf.mxu3 }
 0x15a   :  { %v1003_v26 = vadd.f32 %v1002_v24, %v794_v23 }
 0x15c   :  { %v1212_v30 = vadd.f32 %v1211_v25, %v1003_v26 }
 0x15d   :  { %v587_v31 = vpop.f32.mrf.mxu0  ;;  %v796_v32 = vpop.f32.mrf.mxu1 }
 0x15e   :  { %1556 = vst [vmem:[#allocation8 + $0xa8] sm:$0xff] %v1212_v30  ;;  %v1684_v35 = vadd.f32 %v1620_v27, %v1212_v30  ;;  %1052 = vmatmul.f32.gmra.mxu2 %v402_v28  ;;  %v797_v36 = vadd.f32 %v796_v32, %v587_v31  ;;  %1261 = vmatmul.f32.gmra.mxu3 %v403_v29  ;;  %v1625_v28 = vld [vmem:[#allocation6 + $0xd0] sm:$0xff]  ;;  %v423_v30 = vld [vmem:[#allocation3 + $0x578] sm:$0xff] }
 0x15f   :  { %v422_v29 = vld [vmem:[#allocation3 + $0x570] sm:$0xff] }
 0x160   :  { %1748 = vst [vmem:[#allocation9 + $0xa8] sm:$0xff] %v1684_v35  ;;  %634 = vmatmul.f32.gmra.mxu0 %v400_v33  ;;  %843 = vmatmul.f32.gmra.mxu1 %v401_v34  ;;  %v420_v34 = vld [vmem:[#allocation3 + $0x560] sm:$0xff]  ;;  %v421_v35 = vld [vmem:[#allocation3 + $0x568] sm:$0xff] }
 0x161   :  { %v1005_v37 = vpop.f32.mrf.mxu2  ;;  %v1214_v38 = vpop.f32.mrf.mxu3 }
 0x162   :  { %v1006_v39 = vadd.f32 %v1005_v37, %v797_v36 }
 0x164   :  { %v1215_v43 = vadd.f32 %v1214_v38, %v1006_v39 }
 0x165   :  { %v590_v44 = vpop.f32.mrf.mxu0  ;;  %v799_v45 = vpop.f32.mrf.mxu1 }
 0x166   :  { %1557 = vst [vmem:[#allocation8 + $0xb0] sm:$0xff] %v1215_v43  ;;  %v1685_v48 = vadd.f32 %v1621_v40, %v1215_v43  ;;  %1055 = vmatmul.f32.gmra.mxu2 %v406_v41  ;;  %v800_v49 = vadd.f32 %v799_v45, %v590_v44  ;;  %1264 = vmatmul.f32.gmra.mxu3 %v407_v42  ;;  %v1626_v41 = vld [vmem:[#allocation6 + $0xd8] sm:$0xff]  ;;  %v426_v42 = vld [vmem:[#allocation3 + $0x590] sm:$0xff] }
 0x167   :  { %v427_v43 = vld [vmem:[#allocation3 + $0x598] sm:$0xff] }
 0x168   :  { %1749 = vst [vmem:[#allocation9 + $0xb0] sm:$0xff] %v1685_v48  ;;  %637 = vmatmul.f32.gmra.mxu0 %v404_v46  ;;  %846 = vmatmul.f32.gmra.mxu1 %v405_v47  ;;  %v424_v47 = vld [vmem:[#allocation3 + $0x580] sm:$0xff]  ;;  %v425_v48 = vld [vmem:[#allocation3 + $0x588] sm:$0xff] }
 0x169   :  { %v1008_v50 = vpop.f32.mrf.mxu2  ;;  %v1217_v51 = vpop.f32.mrf.mxu3 }
 0x16a   :  { %v1009_v52 = vadd.f32 %v1008_v50, %v800_v49 }
 0x16c   :  { %v1218_v56 = vadd.f32 %v1217_v51, %v1009_v52 }
 0x16d   :  { %v593_v57 = vpop.f32.mrf.mxu0  ;;  %v802_v58 = vpop.f32.mrf.mxu1 }
 0x16e   :  { %1558 = vst [vmem:[#allocation8 + $0xb8] sm:$0xff] %v1218_v56  ;;  %v1686_v61 = vadd.f32 %v1622_v53, %v1218_v56  ;;  %1058 = vmatmul.f32.gmra.mxu2 %v410_v54  ;;  %v803_v62 = vadd.f32 %v802_v58, %v593_v57  ;;  %1267 = vmatmul.f32.gmra.mxu3 %v411_v55  ;;  %v1627_v54 = vld [vmem:[#allocation6 + $0xe0] sm:$0xff]  ;;  %v430_v55 = vld [vmem:[#allocation3 + $0x5b0] sm:$0xff]  ;;  %v431_v56 = vld [vmem:[#allocation3 + $0x5b8] sm:$0xff] }
 0x170   :  { %1750 = vst [vmem:[#allocation9 + $0xb8] sm:$0xff] %v1686_v61  ;;  %640 = vmatmul.f32.gmra.mxu0 %v408_v59  ;;  %849 = vmatmul.f32.gmra.mxu1 %v409_v60  ;;  %v428_v60 = vld [vmem:[#allocation3 + $0x5a0] sm:$0xff]  ;;  %v429_v61 = vld [vmem:[#allocation3 + $0x5a8] sm:$0xff] }
 0x171   :  { %v1011_v63 = vpop.f32.mrf.mxu2  ;;  %v1220_v0 = vpop.f32.mrf.mxu3 }
 0x172   :  { %v1012_v1 = vadd.f32 %v1011_v63, %v803_v62 }
 0x174   :  { %v1221_v5 = vadd.f32 %v1220_v0, %v1012_v1 }
 0x175   :  { %v596_v6 = vpop.f32.mrf.mxu0  ;;  %v805_v7 = vpop.f32.mrf.mxu1 }
 0x176   :  { %1559 = vst [vmem:[#allocation8 + $0xc0] sm:$0xff] %v1221_v5  ;;  %v1687_v10 = vadd.f32 %v1623_v2, %v1221_v5  ;;  %1061 = vmatmul.f32.gmra.mxu2 %v414_v3  ;;  %v806_v11 = vadd.f32 %v805_v7, %v596_v6  ;;  %1270 = vmatmul.f32.gmra.mxu3 %v415_v4  ;;  %v1628_v3 = vld [vmem:[#allocation6 + $0xe8] sm:$0xff]  ;;  %v434_v4 = vld [vmem:[#allocation3 + $0x5d0] sm:$0xff]  ;;  %v435_v5 = vld [vmem:[#allocation3 + $0x5d8] sm:$0xff] }
 0x178   :  { %1751 = vst [vmem:[#allocation9 + $0xc0] sm:$0xff] %v1687_v10  ;;  %643 = vmatmul.f32.gmra.mxu0 %v412_v8  ;;  %852 = vmatmul.f32.gmra.mxu1 %v413_v9  ;;  %v432_v9 = vld [vmem:[#allocation3 + $0x5c0] sm:$0xff]  ;;  %v433_v10 = vld [vmem:[#allocation3 + $0x5c8] sm:$0xff] }
 0x179   :  { %v1014_v12 = vpop.f32.mrf.mxu2  ;;  %v1223_v13 = vpop.f32.mrf.mxu3 }
 0x17a   :  { %v1015_v14 = vadd.f32 %v1014_v12, %v806_v11 }
 0x17c   :  { %v1224_v18 = vadd.f32 %v1223_v13, %v1015_v14 }
 0x17d   :  { %v599_v19 = vpop.f32.mrf.mxu0  ;;  %v808_v20 = vpop.f32.mrf.mxu1 }
 0x17e   :  { %1560 = vst [vmem:[#allocation8 + $0xc8] sm:$0xff] %v1224_v18  ;;  %v1688_v23 = vadd.f32 %v1624_v15, %v1224_v18  ;;  %1064 = vmatmul.f32.gmra.mxu2 %v418_v16  ;;  %v809_v24 = vadd.f32 %v808_v20, %v599_v19  ;;  %1273 = vmatmul.f32.gmra.mxu3 %v419_v17  ;;  %v1629_v16 = vld [vmem:[#allocation6 + $0xf0] sm:$0xff]  ;;  %v439_v18 = vld [vmem:[#allocation3 + $0x5f8] sm:$0xff] }
 0x17f   :  { %v438_v17 = vld [vmem:[#allocation3 + $0x5f0] sm:$0xff] }
 0x180   :  { %1752 = vst [vmem:[#allocation9 + $0xc8] sm:$0xff] %v1688_v23  ;;  %646 = vmatmul.f32.gmra.mxu0 %v416_v21  ;;  %855 = vmatmul.f32.gmra.mxu1 %v417_v22  ;;  %v436_v22 = vld [vmem:[#allocation3 + $0x5e0] sm:$0xff]  ;;  %v437_v23 = vld [vmem:[#allocation3 + $0x5e8] sm:$0xff] }
 0x181   :  { %v1017_v25 = vpop.f32.mrf.mxu2  ;;  %v1226_v26 = vpop.f32.mrf.mxu3 }
 0x182   :  { %v1018_v27 = vadd.f32 %v1017_v25, %v809_v24 }
 0x184   :  { %v1227_v31 = vadd.f32 %v1226_v26, %v1018_v27 }
 0x185   :  { %v602_v32 = vpop.f32.mrf.mxu0  ;;  %v811_v33 = vpop.f32.mrf.mxu1 }
 0x186   :  { %1561 = vst [vmem:[#allocation8 + $0xd0] sm:$0xff] %v1227_v31  ;;  %v1689_v36 = vadd.f32 %v1625_v28, %v1227_v31  ;;  %1067 = vmatmul.f32.gmra.mxu2 %v422_v29  ;;  %v812_v37 = vadd.f32 %v811_v33, %v602_v32  ;;  %1276 = vmatmul.f32.gmra.mxu3 %v423_v30  ;;  %v1630_v29 = vld [vmem:[#allocation6 + $0xf8] sm:$0xff]  ;;  %v442_v30 = vld [vmem:[#allocation3 + $0x610] sm:$0xff] }
 0x187   :  { %v443_v31 = vld [vmem:[#allocation3 + $0x618] sm:$0xff] }
 0x188   :  { %1753 = vst [vmem:[#allocation9 + $0xd0] sm:$0xff] %v1689_v36  ;;  %649 = vmatmul.f32.gmra.mxu0 %v420_v34  ;;  %858 = vmatmul.f32.gmra.mxu1 %v421_v35  ;;  %v440_v35 = vld [vmem:[#allocation3 + $0x600] sm:$0xff]  ;;  %v441_v36 = vld [vmem:[#allocation3 + $0x608] sm:$0xff] }
 0x189   :  { %v1020_v38 = vpop.f32.mrf.mxu2  ;;  %v1229_v39 = vpop.f32.mrf.mxu3 }
 0x18a   :  { %v1021_v40 = vadd.f32 %v1020_v38, %v812_v37 }
 0x18c   :  { %v1230_v44 = vadd.f32 %v1229_v39, %v1021_v40 }
 0x18d   :  { %v605_v45 = vpop.f32.mrf.mxu0  ;;  %v814_v46 = vpop.f32.mrf.mxu1 }
 0x18e   :  { %1562 = vst [vmem:[#allocation8 + $0xd8] sm:$0xff] %v1230_v44  ;;  %v1690_v49 = vadd.f32 %v1626_v41, %v1230_v44  ;;  %1070 = vmatmul.f32.gmra.mxu2 %v426_v42  ;;  %v815_v50 = vadd.f32 %v814_v46, %v605_v45  ;;  %1279 = vmatmul.f32.gmra.mxu3 %v427_v43  ;;  %v1631_v42 = vld [vmem:[#allocation6 + $0x100] sm:$0xff]  ;;  %v446_v43 = vld [vmem:[#allocation3 + $0x630] sm:$0xff]  ;;  %v447_v44 = vld [vmem:[#allocation3 + $0x638] sm:$0xff] }
 0x190   :  { %1754 = vst [vmem:[#allocation9 + $0xd8] sm:$0xff] %v1690_v49  ;;  %652 = vmatmul.f32.gmra.mxu0 %v424_v47  ;;  %861 = vmatmul.f32.gmra.mxu1 %v425_v48  ;;  %v444_v48 = vld [vmem:[#allocation3 + $0x620] sm:$0xff]  ;;  %v445_v49 = vld [vmem:[#allocation3 + $0x628] sm:$0xff] }
 0x191   :  { %v1023_v51 = vpop.f32.mrf.mxu2  ;;  %v1232_v52 = vpop.f32.mrf.mxu3 }
 0x192   :  { %v1024_v53 = vadd.f32 %v1023_v51, %v815_v50 }
 0x194   :  { %v1233_v57 = vadd.f32 %v1232_v52, %v1024_v53 }
 0x195   :  { %v608_v58 = vpop.f32.mrf.mxu0  ;;  %v817_v59 = vpop.f32.mrf.mxu1 }
 0x196   :  { %1563 = vst [vmem:[#allocation8 + $0xe0] sm:$0xff] %v1233_v57  ;;  %v1691_v62 = vadd.f32 %v1627_v54, %v1233_v57  ;;  %1073 = vmatmul.f32.gmra.mxu2 %v430_v55  ;;  %v818_v63 = vadd.f32 %v817_v59, %v608_v58  ;;  %1282 = vmatmul.f32.gmra.mxu3 %v431_v56  ;;  %v1632_v55 = vld [vmem:[#allocation6 + $0x108] sm:$0xff]  ;;  %v450_v56 = vld [vmem:[#allocation3 + $0x650] sm:$0xff]  ;;  %v451_v57 = vld [vmem:[#allocation3 + $0x658] sm:$0xff] }
 0x198   :  { %1755 = vst [vmem:[#allocation9 + $0xe0] sm:$0xff] %v1691_v62  ;;  %655 = vmatmul.f32.gmra.mxu0 %v428_v60  ;;  %864 = vmatmul.f32.gmra.mxu1 %v429_v61  ;;  %v448_v61 = vld [vmem:[#allocation3 + $0x640] sm:$0xff]  ;;  %v449_v62 = vld [vmem:[#allocation3 + $0x648] sm:$0xff] }
 0x199   :  { %v1026_v0 = vpop.f32.mrf.mxu2  ;;  %v1235_v1 = vpop.f32.mrf.mxu3 }
 0x19a   :  { %v1027_v2 = vadd.f32 %v1026_v0, %v818_v63 }
 0x19c   :  { %v1236_v6 = vadd.f32 %v1235_v1, %v1027_v2 }
 0x19d   :  { %v611_v7 = vpop.f32.mrf.mxu0  ;;  %v820_v8 = vpop.f32.mrf.mxu1 }
 0x19e   :  { %1564 = vst [vmem:[#allocation8 + $0xe8] sm:$0xff] %v1236_v6  ;;  %v1692_v11 = vadd.f32 %v1628_v3, %v1236_v6  ;;  %1076 = vmatmul.f32.gmra.mxu2 %v434_v4  ;;  %v821_v12 = vadd.f32 %v820_v8, %v611_v7  ;;  %1285 = vmatmul.f32.gmra.mxu3 %v435_v5  ;;  %v1633_v4 = vld [vmem:[#allocation6 + $0x110] sm:$0xff]  ;;  %v455_v6 = vld [vmem:[#allocation3 + $0x678] sm:$0xff] }
 0x19f   :  { %v454_v5 = vld [vmem:[#allocation3 + $0x670] sm:$0xff] }
 0x1a0   :  { %1756 = vst [vmem:[#allocation9 + $0xe8] sm:$0xff] %v1692_v11  ;;  %658 = vmatmul.f32.gmra.mxu0 %v432_v9  ;;  %867 = vmatmul.f32.gmra.mxu1 %v433_v10  ;;  %v452_v10 = vld [vmem:[#allocation3 + $0x660] sm:$0xff]  ;;  %v453_v11 = vld [vmem:[#allocation3 + $0x668] sm:$0xff] }
 0x1a1   :  { %v1029_v13 = vpop.f32.mrf.mxu2  ;;  %v1238_v14 = vpop.f32.mrf.mxu3 }
 0x1a2   :  { %v1030_v15 = vadd.f32 %v1029_v13, %v821_v12 }
 0x1a4   :  { %v1239_v19 = vadd.f32 %v1238_v14, %v1030_v15 }
 0x1a5   :  { %v614_v20 = vpop.f32.mrf.mxu0  ;;  %v823_v21 = vpop.f32.mrf.mxu1 }
 0x1a6   :  { %1565 = vst [vmem:[#allocation8 + $0xf0] sm:$0xff] %v1239_v19  ;;  %v1693_v24 = vadd.f32 %v1629_v16, %v1239_v19  ;;  %1079 = vmatmul.f32.gmra.mxu2 %v438_v17  ;;  %v824_v25 = vadd.f32 %v823_v21, %v614_v20  ;;  %1288 = vmatmul.f32.gmra.mxu3 %v439_v18  ;;  %v1634_v17 = vld [vmem:[#allocation6 + $0x118] sm:$0xff]  ;;  %v458_v18 = vld [vmem:[#allocation3 + $0x690] sm:$0xff] }
 0x1a7   :  { %v459_v19 = vld [vmem:[#allocation3 + $0x698] sm:$0xff] }
 0x1a8   :  { %1757 = vst [vmem:[#allocation9 + $0xf0] sm:$0xff] %v1693_v24  ;;  %661 = vmatmul.f32.gmra.mxu0 %v436_v22  ;;  %870 = vmatmul.f32.gmra.mxu1 %v437_v23  ;;  %v456_v23 = vld [vmem:[#allocation3 + $0x680] sm:$0xff]  ;;  %v457_v24 = vld [vmem:[#allocation3 + $0x688] sm:$0xff] }
 0x1a9   :  { %v1032_v26 = vpop.f32.mrf.mxu2  ;;  %v1241_v27 = vpop.f32.mrf.mxu3 }
 0x1aa   :  { %v1033_v28 = vadd.f32 %v1032_v26, %v824_v25 }
 0x1ac   :  { %v1242_v32 = vadd.f32 %v1241_v27, %v1033_v28 }
 0x1ad   :  { %v617_v33 = vpop.f32.mrf.mxu0  ;;  %v826_v34 = vpop.f32.mrf.mxu1 }
 0x1ae   :  { %1566 = vst [vmem:[#allocation8 + $0xf8] sm:$0xff] %v1242_v32  ;;  %v1694_v37 = vadd.f32 %v1630_v29, %v1242_v32  ;;  %1082 = vmatmul.f32.gmra.mxu2 %v442_v30  ;;  %v827_v38 = vadd.f32 %v826_v34, %v617_v33  ;;  %1291 = vmatmul.f32.gmra.mxu3 %v443_v31  ;;  %v1635_v30 = vld [vmem:[#allocation6 + $0x120] sm:$0xff]  ;;  %v462_v31 = vld [vmem:[#allocation3 + $0x6b0] sm:$0xff]  ;;  %v463_v32 = vld [vmem:[#allocation3 + $0x6b8] sm:$0xff] }
 0x1b0   :  { %1758 = vst [vmem:[#allocation9 + $0xf8] sm:$0xff] %v1694_v37  ;;  %664 = vmatmul.f32.gmra.mxu0 %v440_v35  ;;  %873 = vmatmul.f32.gmra.mxu1 %v441_v36  ;;  %v460_v36 = vld [vmem:[#allocation3 + $0x6a0] sm:$0xff]  ;;  %v461_v37 = vld [vmem:[#allocation3 + $0x6a8] sm:$0xff] }
 0x1b1   :  { %v1035_v39 = vpop.f32.mrf.mxu2  ;;  %v1244_v40 = vpop.f32.mrf.mxu3 }
 0x1b2   :  { %v1036_v41 = vadd.f32 %v1035_v39, %v827_v38 }
 0x1b4   :  { %v1245_v45 = vadd.f32 %v1244_v40, %v1036_v41 }
 0x1b5   :  { %v620_v46 = vpop.f32.mrf.mxu0  ;;  %v829_v47 = vpop.f32.mrf.mxu1 }
 0x1b6   :  { %1567 = vst [vmem:[#allocation8 + $0x100] sm:$0xff] %v1245_v45  ;;  %v1695_v50 = vadd.f32 %v1631_v42, %v1245_v45  ;;  %1085 = vmatmul.f32.gmra.mxu2 %v446_v43  ;;  %v830_v51 = vadd.f32 %v829_v47, %v620_v46  ;;  %1294 = vmatmul.f32.gmra.mxu3 %v447_v44  ;;  %v1636_v43 = vld [vmem:[#allocation6 + $0x128] sm:$0xff]  ;;  %v466_v44 = vld [vmem:[#allocation3 + $0x6d0] sm:$0xff]  ;;  %v467_v45 = vld [vmem:[#allocation3 + $0x6d8] sm:$0xff] }
 0x1b8   :  { %1759 = vst [vmem:[#allocation9 + $0x100] sm:$0xff] %v1695_v50  ;;  %667 = vmatmul.f32.gmra.mxu0 %v444_v48  ;;  %876 = vmatmul.f32.gmra.mxu1 %v445_v49  ;;  %v464_v49 = vld [vmem:[#allocation3 + $0x6c0] sm:$0xff]  ;;  %v465_v50 = vld [vmem:[#allocation3 + $0x6c8] sm:$0xff] }
 0x1b9   :  { %v1038_v52 = vpop.f32.mrf.mxu2  ;;  %v1247_v53 = vpop.f32.mrf.mxu3 }
 0x1ba   :  { %v1039_v54 = vadd.f32 %v1038_v52, %v830_v51 }
 0x1bc   :  { %v1248_v58 = vadd.f32 %v1247_v53, %v1039_v54 }
 0x1bd   :  { %v623_v59 = vpop.f32.mrf.mxu0  ;;  %v832_v60 = vpop.f32.mrf.mxu1 }
 0x1be   :  { %1568 = vst [vmem:[#allocation8 + $0x108] sm:$0xff] %v1248_v58  ;;  %v1696_v63 = vadd.f32 %v1632_v55, %v1248_v58  ;;  %1088 = vmatmul.f32.gmra.mxu2 %v450_v56  ;;  %v833_v0 = vadd.f32 %v832_v60, %v623_v59  ;;  %1297 = vmatmul.f32.gmra.mxu3 %v451_v57  ;;  %v1637_v56 = vld [vmem:[#allocation6 + $0x130] sm:$0xff]  ;;  %v471_v58 = vld [vmem:[#allocation3 + $0x6f8] sm:$0xff] }
 0x1bf   :  { %v470_v57 = vld [vmem:[#allocation3 + $0x6f0] sm:$0xff] }
 0x1c0   :  { %1760 = vst [vmem:[#allocation9 + $0x108] sm:$0xff] %v1696_v63  ;;  %670 = vmatmul.f32.gmra.mxu0 %v448_v61  ;;  %879 = vmatmul.f32.gmra.mxu1 %v449_v62  ;;  %v468_v62 = vld [vmem:[#allocation3 + $0x6e0] sm:$0xff]  ;;  %v469_v63 = vld [vmem:[#allocation3 + $0x6e8] sm:$0xff] }
 0x1c1   :  { %v1041_v1 = vpop.f32.mrf.mxu2  ;;  %v1250_v2 = vpop.f32.mrf.mxu3 }
 0x1c2   :  { %v1042_v3 = vadd.f32 %v1041_v1, %v833_v0 }
 0x1c4   :  { %v1251_v7 = vadd.f32 %v1250_v2, %v1042_v3 }
 0x1c5   :  { %v626_v8 = vpop.f32.mrf.mxu0  ;;  %v835_v9 = vpop.f32.mrf.mxu1 }
 0x1c6   :  { %1569 = vst [vmem:[#allocation8 + $0x110] sm:$0xff] %v1251_v7  ;;  %v1697_v12 = vadd.f32 %v1633_v4, %v1251_v7  ;;  %1091 = vmatmul.f32.gmra.mxu2 %v454_v5  ;;  %v836_v13 = vadd.f32 %v835_v9, %v626_v8  ;;  %1300 = vmatmul.f32.gmra.mxu3 %v455_v6  ;;  %v1638_v5 = vld [vmem:[#allocation6 + $0x138] sm:$0xff]  ;;  %v474_v6 = vld [vmem:[#allocation3 + $0x710] sm:$0xff] }
 0x1c7   :  { %v475_v7 = vld [vmem:[#allocation3 + $0x718] sm:$0xff] }
 0x1c8   :  { %1761 = vst [vmem:[#allocation9 + $0x110] sm:$0xff] %v1697_v12  ;;  %673 = vmatmul.f32.gmra.mxu0 %v452_v10  ;;  %882 = vmatmul.f32.gmra.mxu1 %v453_v11  ;;  %v472_v11 = vld [vmem:[#allocation3 + $0x700] sm:$0xff]  ;;  %v473_v12 = vld [vmem:[#allocation3 + $0x708] sm:$0xff] }
 0x1c9   :  { %v1044_v14 = vpop.f32.mrf.mxu2  ;;  %v1253_v15 = vpop.f32.mrf.mxu3 }
 0x1ca   :  { %v1045_v16 = vadd.f32 %v1044_v14, %v836_v13 }
 0x1cc   :  { %v1254_v20 = vadd.f32 %v1253_v15, %v1045_v16 }
 0x1cd   :  { %v629_v21 = vpop.f32.mrf.mxu0  ;;  %v838_v22 = vpop.f32.mrf.mxu1 }
 0x1ce   :  { %1570 = vst [vmem:[#allocation8 + $0x118] sm:$0xff] %v1254_v20  ;;  %v1698_v25 = vadd.f32 %v1634_v17, %v1254_v20  ;;  %1094 = vmatmul.f32.gmra.mxu2 %v458_v18  ;;  %v839_v26 = vadd.f32 %v838_v22, %v629_v21  ;;  %1303 = vmatmul.f32.gmra.mxu3 %v459_v19  ;;  %v1639_v18 = vld [vmem:[#allocation6 + $0x140] sm:$0xff]  ;;  %v478_v19 = vld [vmem:[#allocation3 + $0x730] sm:$0xff]  ;;  %v479_v20 = vld [vmem:[#allocation3 + $0x738] sm:$0xff] }
 0x1d0   :  { %1762 = vst [vmem:[#allocation9 + $0x118] sm:$0xff] %v1698_v25  ;;  %676 = vmatmul.f32.gmra.mxu0 %v456_v23  ;;  %885 = vmatmul.f32.gmra.mxu1 %v457_v24  ;;  %v476_v24 = vld [vmem:[#allocation3 + $0x720] sm:$0xff]  ;;  %v477_v25 = vld [vmem:[#allocation3 + $0x728] sm:$0xff] }
 0x1d1   :  { %v1047_v27 = vpop.f32.mrf.mxu2  ;;  %v1256_v28 = vpop.f32.mrf.mxu3 }
 0x1d2   :  { %v1048_v29 = vadd.f32 %v1047_v27, %v839_v26 }
 0x1d4   :  { %v1257_v33 = vadd.f32 %v1256_v28, %v1048_v29 }
 0x1d5   :  { %v632_v34 = vpop.f32.mrf.mxu0  ;;  %v841_v35 = vpop.f32.mrf.mxu1 }
 0x1d6   :  { %1571 = vst [vmem:[#allocation8 + $0x120] sm:$0xff] %v1257_v33  ;;  %v1699_v38 = vadd.f32 %v1635_v30, %v1257_v33  ;;  %1097 = vmatmul.f32.gmra.mxu2 %v462_v31  ;;  %v842_v39 = vadd.f32 %v841_v35, %v632_v34  ;;  %1306 = vmatmul.f32.gmra.mxu3 %v463_v32  ;;  %v1640_v31 = vld [vmem:[#allocation6 + $0x148] sm:$0xff]  ;;  %v482_v32 = vld [vmem:[#allocation3 + $0x750] sm:$0xff]  ;;  %v483_v33 = vld [vmem:[#allocation3 + $0x758] sm:$0xff] }
 0x1d8   :  { %1763 = vst [vmem:[#allocation9 + $0x120] sm:$0xff] %v1699_v38  ;;  %679 = vmatmul.f32.gmra.mxu0 %v460_v36  ;;  %888 = vmatmul.f32.gmra.mxu1 %v461_v37  ;;  %v480_v37 = vld [vmem:[#allocation3 + $0x740] sm:$0xff]  ;;  %v481_v38 = vld [vmem:[#allocation3 + $0x748] sm:$0xff] }
 0x1d9   :  { %v1050_v40 = vpop.f32.mrf.mxu2  ;;  %v1259_v41 = vpop.f32.mrf.mxu3 }
 0x1da   :  { %v1051_v42 = vadd.f32 %v1050_v40, %v842_v39 }
 0x1dc   :  { %v1260_v46 = vadd.f32 %v1259_v41, %v1051_v42 }
 0x1dd   :  { %v635_v47 = vpop.f32.mrf.mxu0  ;;  %v844_v48 = vpop.f32.mrf.mxu1 }
 0x1de   :  { %1572 = vst [vmem:[#allocation8 + $0x128] sm:$0xff] %v1260_v46  ;;  %v1700_v51 = vadd.f32 %v1636_v43, %v1260_v46  ;;  %1100 = vmatmul.f32.gmra.mxu2 %v466_v44  ;;  %v845_v52 = vadd.f32 %v844_v48, %v635_v47  ;;  %1309 = vmatmul.f32.gmra.mxu3 %v467_v45  ;;  %v1641_v44 = vld [vmem:[#allocation6 + $0x150] sm:$0xff]  ;;  %v487_v46 = vld [vmem:[#allocation3 + $0x778] sm:$0xff] }
 0x1df   :  { %v486_v45 = vld [vmem:[#allocation3 + $0x770] sm:$0xff] }
 0x1e0   :  { %1764 = vst [vmem:[#allocation9 + $0x128] sm:$0xff] %v1700_v51  ;;  %682 = vmatmul.f32.gmra.mxu0 %v464_v49  ;;  %891 = vmatmul.f32.gmra.mxu1 %v465_v50  ;;  %v484_v50 = vld [vmem:[#allocation3 + $0x760] sm:$0xff]  ;;  %v485_v51 = vld [vmem:[#allocation3 + $0x768] sm:$0xff] }
 0x1e1   :  { %v1053_v53 = vpop.f32.mrf.mxu2  ;;  %v1262_v54 = vpop.f32.mrf.mxu3 }
 0x1e2   :  { %v1054_v55 = vadd.f32 %v1053_v53, %v845_v52 }
 0x1e4   :  { %v1263_v59 = vadd.f32 %v1262_v54, %v1054_v55 }
 0x1e5   :  { %v638_v60 = vpop.f32.mrf.mxu0  ;;  %v847_v61 = vpop.f32.mrf.mxu1 }
 0x1e6   :  { %1573 = vst [vmem:[#allocation8 + $0x130] sm:$0xff] %v1263_v59  ;;  %v1701_v0 = vadd.f32 %v1637_v56, %v1263_v59  ;;  %1103 = vmatmul.f32.gmra.mxu2 %v470_v57  ;;  %v848_v1 = vadd.f32 %v847_v61, %v638_v60  ;;  %1312 = vmatmul.f32.gmra.mxu3 %v471_v58  ;;  %v1642_v57 = vld [vmem:[#allocation6 + $0x158] sm:$0xff]  ;;  %v490_v58 = vld [vmem:[#allocation3 + $0x790] sm:$0xff] }
 0x1e7   :  { %v491_v59 = vld [vmem:[#allocation3 + $0x798] sm:$0xff] }
 0x1e8   :  { %1765 = vst [vmem:[#allocation9 + $0x130] sm:$0xff] %v1701_v0  ;;  %685 = vmatmul.f32.gmra.mxu0 %v468_v62  ;;  %894 = vmatmul.f32.gmra.mxu1 %v469_v63  ;;  %v488_v63 = vld [vmem:[#allocation3 + $0x780] sm:$0xff]  ;;  %v489_v0 = vld [vmem:[#allocation3 + $0x788] sm:$0xff] }
 0x1e9   :  { %v1056_v2 = vpop.f32.mrf.mxu2  ;;  %v1265_v3 = vpop.f32.mrf.mxu3 }
 0x1ea   :  { %v1057_v4 = vadd.f32 %v1056_v2, %v848_v1 }
 0x1ec   :  { %v1266_v8 = vadd.f32 %v1265_v3, %v1057_v4 }
 0x1ed   :  { %v641_v9 = vpop.f32.mrf.mxu0  ;;  %v850_v10 = vpop.f32.mrf.mxu1 }
 0x1ee   :  { %1574 = vst [vmem:[#allocation8 + $0x138] sm:$0xff] %v1266_v8  ;;  %v1702_v13 = vadd.f32 %v1638_v5, %v1266_v8  ;;  %1106 = vmatmul.f32.gmra.mxu2 %v474_v6  ;;  %v851_v14 = vadd.f32 %v850_v10, %v641_v9  ;;  %1315 = vmatmul.f32.gmra.mxu3 %v475_v7  ;;  %v1643_v6 = vld [vmem:[#allocation6 + $0x160] sm:$0xff]  ;;  %v494_v7 = vld [vmem:[#allocation3 + $0x7b0] sm:$0xff]  ;;  %v495_v8 = vld [vmem:[#allocation3 + $0x7b8] sm:$0xff] }
 0x1f0   :  { %1766 = vst [vmem:[#allocation9 + $0x138] sm:$0xff] %v1702_v13  ;;  %688 = vmatmul.f32.gmra.mxu0 %v472_v11  ;;  %897 = vmatmul.f32.gmra.mxu1 %v473_v12  ;;  %v492_v12 = vld [vmem:[#allocation3 + $0x7a0] sm:$0xff]  ;;  %v493_v13 = vld [vmem:[#allocation3 + $0x7a8] sm:$0xff] }
 0x1f1   :  { %v1059_v15 = vpop.f32.mrf.mxu2  ;;  %v1268_v16 = vpop.f32.mrf.mxu3 }
 0x1f2   :  { %v1060_v17 = vadd.f32 %v1059_v15, %v851_v14 }
 0x1f4   :  { %v1269_v21 = vadd.f32 %v1268_v16, %v1060_v17 }
 0x1f5   :  { %v644_v22 = vpop.f32.mrf.mxu0  ;;  %v853_v23 = vpop.f32.mrf.mxu1 }
 0x1f6   :  { %1575 = vst [vmem:[#allocation8 + $0x140] sm:$0xff] %v1269_v21  ;;  %v1703_v26 = vadd.f32 %v1639_v18, %v1269_v21  ;;  %1109 = vmatmul.f32.gmra.mxu2 %v478_v19  ;;  %v854_v27 = vadd.f32 %v853_v23, %v644_v22  ;;  %1318 = vmatmul.f32.gmra.mxu3 %v479_v20  ;;  %v1644_v19 = vld [vmem:[#allocation6 + $0x168] sm:$0xff]  ;;  %v498_v20 = vld [vmem:[#allocation3 + $0x7d0] sm:$0xff]  ;;  %v499_v21 = vld [vmem:[#allocation3 + $0x7d8] sm:$0xff] }
 0x1f8   :  { %1767 = vst [vmem:[#allocation9 + $0x140] sm:$0xff] %v1703_v26  ;;  %691 = vmatmul.f32.gmra.mxu0 %v476_v24  ;;  %900 = vmatmul.f32.gmra.mxu1 %v477_v25  ;;  %v496_v25 = vld [vmem:[#allocation3 + $0x7c0] sm:$0xff]  ;;  %v497_v26 = vld [vmem:[#allocation3 + $0x7c8] sm:$0xff] }
 0x1f9   :  { %v1062_v28 = vpop.f32.mrf.mxu2  ;;  %v1271_v29 = vpop.f32.mrf.mxu3 }
 0x1fa   :  { %v1063_v30 = vadd.f32 %v1062_v28, %v854_v27 }
 0x1fc   :  { %v1272_v34 = vadd.f32 %v1271_v29, %v1063_v30 }
 0x1fd   :  { %v647_v35 = vpop.f32.mrf.mxu0  ;;  %v856_v36 = vpop.f32.mrf.mxu1 }
 0x1fe   :  { %1576 = vst [vmem:[#allocation8 + $0x148] sm:$0xff] %v1272_v34  ;;  %v1704_v39 = vadd.f32 %v1640_v31, %v1272_v34  ;;  %1112 = vmatmul.f32.gmra.mxu2 %v482_v32  ;;  %v857_v40 = vadd.f32 %v856_v36, %v647_v35  ;;  %1321 = vmatmul.f32.gmra.mxu3 %v483_v33  ;;  %v1645_v32 = vld [vmem:[#allocation6 + $0x170] sm:$0xff]  ;;  %v503_v34 = vld [vmem:[#allocation3 + $0x7f8] sm:$0xff] }
 0x1ff   :  { %v502_v33 = vld [vmem:[#allocation3 + $0x7f0] sm:$0xff] }
 0x200   :  { %1768 = vst [vmem:[#allocation9 + $0x148] sm:$0xff] %v1704_v39  ;;  %694 = vmatmul.f32.gmra.mxu0 %v480_v37  ;;  %903 = vmatmul.f32.gmra.mxu1 %v481_v38  ;;  %v500_v38 = vld [vmem:[#allocation3 + $0x7e0] sm:$0xff]  ;;  %v501_v39 = vld [vmem:[#allocation3 + $0x7e8] sm:$0xff] }
 0x201   :  { %v1065_v41 = vpop.f32.mrf.mxu2  ;;  %v1274_v42 = vpop.f32.mrf.mxu3 }
 0x202   :  { %v1066_v43 = vadd.f32 %v1065_v41, %v857_v40 }
 0x204   :  { %v1275_v47 = vadd.f32 %v1274_v42, %v1066_v43 }
 0x205   :  { %v650_v48 = vpop.f32.mrf.mxu0  ;;  %v859_v49 = vpop.f32.mrf.mxu1 }
 0x206   :  { %1577 = vst [vmem:[#allocation8 + $0x150] sm:$0xff] %v1275_v47  ;;  %v1705_v52 = vadd.f32 %v1641_v44, %v1275_v47  ;;  %1115 = vmatmul.f32.gmra.mxu2 %v486_v45  ;;  %v860_v53 = vadd.f32 %v859_v49, %v650_v48  ;;  %1324 = vmatmul.f32.gmra.mxu3 %v487_v46  ;;  %v1646_v45 = vld [vmem:[#allocation6 + $0x178] sm:$0xff] }
 0x208   :  { %1769 = vst [vmem:[#allocation9 + $0x150] sm:$0xff] %v1705_v52  ;;  %697 = vmatmul.f32.gmra.mxu0 %v484_v50  ;;  %906 = vmatmul.f32.gmra.mxu1 %v485_v51 }
 0x209   :  { %v1068_v54 = vpop.f32.mrf.mxu2  ;;  %v1277_v55 = vpop.f32.mrf.mxu3 }
 0x20a   :  { %v1069_v56 = vadd.f32 %v1068_v54, %v860_v53  ;;  %v1647_v54 = vld [vmem:[#allocation6 + $0x180] sm:$0xff] }
 0x20c   :  { %v1278_v60 = vadd.f32 %v1277_v55, %v1069_v56 }
 0x20d   :  { %v653_v61 = vpop.f32.mrf.mxu0  ;;  %v862_v62 = vpop.f32.mrf.mxu1 }
 0x20e   :  { %1578 = vst [vmem:[#allocation8 + $0x158] sm:$0xff] %v1278_v60  ;;  %v1706_v1 = vadd.f32 %v1642_v57, %v1278_v60  ;;  %1118 = vmatmul.f32.gmra.mxu2 %v490_v58  ;;  %v863_v2 = vadd.f32 %v862_v62, %v653_v61  ;;  %1327 = vmatmul.f32.gmra.mxu3 %v491_v59 }
 0x210   :  { %1770 = vst [vmem:[#allocation9 + $0x158] sm:$0xff] %v1706_v1  ;;  %700 = vmatmul.f32.gmra.mxu0 %v488_v63  ;;  %909 = vmatmul.f32.gmra.mxu1 %v489_v0  ;;  %v1648_v63 = vld [vmem:[#allocation6 + $0x188] sm:$0xff] }
 0x211   :  { %v1071_v3 = vpop.f32.mrf.mxu2  ;;  %v1280_v4 = vpop.f32.mrf.mxu3 }
 0x212   :  { %v1072_v5 = vadd.f32 %v1071_v3, %v863_v2 }
 0x214   :  { %v1281_v9 = vadd.f32 %v1280_v4, %v1072_v5 }
 0x215   :  { %v656_v10 = vpop.f32.mrf.mxu0  ;;  %v865_v11 = vpop.f32.mrf.mxu1 }
 0x216   :  { %1579 = vst [vmem:[#allocation8 + $0x160] sm:$0xff] %v1281_v9  ;;  %v1707_v14 = vadd.f32 %v1643_v6, %v1281_v9  ;;  %1121 = vmatmul.f32.gmra.mxu2 %v494_v7  ;;  %v866_v15 = vadd.f32 %v865_v11, %v656_v10  ;;  %1330 = vmatmul.f32.gmra.mxu3 %v495_v8  ;;  %v1649_v8 = vld [vmem:[#allocation6 + $0x190] sm:$0xff] }
 0x218   :  { %1771 = vst [vmem:[#allocation9 + $0x160] sm:$0xff] %v1707_v14  ;;  %703 = vmatmul.f32.gmra.mxu0 %v492_v12  ;;  %912 = vmatmul.f32.gmra.mxu1 %v493_v13 }
 0x219   :  { %v1074_v16 = vpop.f32.mrf.mxu2  ;;  %v1283_v17 = vpop.f32.mrf.mxu3 }
 0x21a   :  { %v1075_v18 = vadd.f32 %v1074_v16, %v866_v15 }
 0x21c   :  { %v1284_v22 = vadd.f32 %v1283_v17, %v1075_v18  ;;  %v1650_v17 = vld [vmem:[#allocation6 + $0x198] sm:$0xff] }
 0x21d   :  { %v659_v23 = vpop.f32.mrf.mxu0  ;;  %v868_v24 = vpop.f32.mrf.mxu1 }
 0x21e   :  { %1580 = vst [vmem:[#allocation8 + $0x168] sm:$0xff] %v1284_v22  ;;  %v1708_v27 = vadd.f32 %v1644_v19, %v1284_v22  ;;  %1124 = vmatmul.f32.gmra.mxu2 %v498_v20  ;;  %v869_v28 = vadd.f32 %v868_v24, %v659_v23  ;;  %1333 = vmatmul.f32.gmra.mxu3 %v499_v21 }
 0x220   :  { %1772 = vst [vmem:[#allocation9 + $0x168] sm:$0xff] %v1708_v27  ;;  %706 = vmatmul.f32.gmra.mxu0 %v496_v25  ;;  %915 = vmatmul.f32.gmra.mxu1 %v497_v26  ;;  %v1651_v26 = vld [vmem:[#allocation6 + $0x1a0] sm:$0xff] }
 0x221   :  { %v1077_v29 = vpop.f32.mrf.mxu2  ;;  %v1286_v30 = vpop.f32.mrf.mxu3 }
 0x222   :  { %v1078_v31 = vadd.f32 %v1077_v29, %v869_v28 }
 0x224   :  { %v1287_v35 = vadd.f32 %v1286_v30, %v1078_v31 }
 0x225   :  { %v662_v36 = vpop.f32.mrf.mxu0  ;;  %v871_v37 = vpop.f32.mrf.mxu1 }
 0x226   :  { %1581 = vst [vmem:[#allocation8 + $0x170] sm:$0xff] %v1287_v35  ;;  %v1709_v40 = vadd.f32 %v1645_v32, %v1287_v35  ;;  %1127 = vmatmul.f32.gmra.mxu2 %v502_v33  ;;  %v872_v41 = vadd.f32 %v871_v37, %v662_v36  ;;  %1336 = vmatmul.f32.gmra.mxu3 %v503_v34  ;;  %v1652_v35 = vld [vmem:[#allocation6 + $0x1a8] sm:$0xff] }
 0x228   :  { %1773 = vst [vmem:[#allocation9 + $0x170] sm:$0xff] %v1709_v40  ;;  %709 = vmatmul.f32.gmra.mxu0 %v500_v38  ;;  %918 = vmatmul.f32.gmra.mxu1 %v501_v39 }
 0x229   :  { %v1080_v42 = vpop.f32.mrf.mxu2  ;;  %v1289_v43 = vpop.f32.mrf.mxu3 }
 0x22a   :  { %v1081_v44 = vadd.f32 %v1080_v42, %v872_v41 }
 0x22c   :  { %v1290_v46 = vadd.f32 %v1289_v43, %v1081_v44  ;;  %v1653_v44 = vld [vmem:[#allocation6 + $0x1b0] sm:$0xff] }
 0x22d   :  { %v665_v47 = vpop.f32.mrf.mxu0  ;;  %v874_v48 = vpop.f32.mrf.mxu1 }
 0x22e   :  { %1582 = vst [vmem:[#allocation8 + $0x178] sm:$0xff] %v1290_v46  ;;  %v1710_v49 = vadd.f32 %v1646_v45, %v1290_v46  ;;  %v875_v50 = vadd.f32 %v874_v48, %v665_v47 }
 0x230   :  { %1774 = vst [vmem:[#allocation9 + $0x178] sm:$0xff] %v1710_v49 }
 0x231   :  { %v1083_v51 = vpop.f32.mrf.mxu2  ;;  %v1292_v52 = vpop.f32.mrf.mxu3 }
 0x232   :  { %v1084_v53 = vadd.f32 %v1083_v51, %v875_v50 }
 0x234   :  { %v1293_v55 = vadd.f32 %v1292_v52, %v1084_v53  ;;  %v1654_v53 = vld [vmem:[#allocation6 + $0x1b8] sm:$0xff] }
 0x235   :  { %v668_v56 = vpop.f32.mrf.mxu0  ;;  %v877_v57 = vpop.f32.mrf.mxu1 }
 0x236   :  { %1583 = vst [vmem:[#allocation8 + $0x180] sm:$0xff] %v1293_v55  ;;  %v1711_v58 = vadd.f32 %v1647_v54, %v1293_v55  ;;  %v878_v59 = vadd.f32 %v877_v57, %v668_v56 }
 0x238   :  { %1775 = vst [vmem:[#allocation9 + $0x180] sm:$0xff] %v1711_v58 }
 0x239   :  { %v1086_v60 = vpop.f32.mrf.mxu2  ;;  %v1295_v61 = vpop.f32.mrf.mxu3 }
 0x23a   :  { %v1087_v62 = vadd.f32 %v1086_v60, %v878_v59 }
 0x23c   :  { %v1296_v0 = vadd.f32 %v1295_v61, %v1087_v62  ;;  %v1655_v62 = vld [vmem:[#allocation6 + $0x1c0] sm:$0xff] }
 0x23d   :  { %v671_v1 = vpop.f32.mrf.mxu0  ;;  %v880_v2 = vpop.f32.mrf.mxu1 }
 0x23e   :  { %1584 = vst [vmem:[#allocation8 + $0x188] sm:$0xff] %v1296_v0  ;;  %v1712_v3 = vadd.f32 %v1648_v63, %v1296_v0  ;;  %v881_v4 = vadd.f32 %v880_v2, %v671_v1 }
 0x240   :  { %1776 = vst [vmem:[#allocation9 + $0x188] sm:$0xff] %v1712_v3 }
 0x241   :  { %v1089_v5 = vpop.f32.mrf.mxu2  ;;  %v1298_v6 = vpop.f32.mrf.mxu3 }
 0x242   :  { %v1090_v7 = vadd.f32 %v1089_v5, %v881_v4 }
 0x244   :  { %v1299_v9 = vadd.f32 %v1298_v6, %v1090_v7  ;;  %v1656_v7 = vld [vmem:[#allocation6 + $0x1c8] sm:$0xff] }
 0x245   :  { %v674_v10 = vpop.f32.mrf.mxu0  ;;  %v883_v11 = vpop.f32.mrf.mxu1 }
 0x246   :  { %1585 = vst [vmem:[#allocation8 + $0x190] sm:$0xff] %v1299_v9  ;;  %v1713_v12 = vadd.f32 %v1649_v8, %v1299_v9  ;;  %v884_v13 = vadd.f32 %v883_v11, %v674_v10 }
 0x248   :  { %1777 = vst [vmem:[#allocation9 + $0x190] sm:$0xff] %v1713_v12 }
 0x249   :  { %v1092_v14 = vpop.f32.mrf.mxu2  ;;  %v1301_v15 = vpop.f32.mrf.mxu3 }
 0x24a   :  { %v1093_v16 = vadd.f32 %v1092_v14, %v884_v13 }
 0x24c   :  { %v1302_v18 = vadd.f32 %v1301_v15, %v1093_v16  ;;  %v1657_v16 = vld [vmem:[#allocation6 + $0x1d0] sm:$0xff] }
 0x24d   :  { %v677_v19 = vpop.f32.mrf.mxu0  ;;  %v886_v20 = vpop.f32.mrf.mxu1 }
 0x24e   :  { %1586 = vst [vmem:[#allocation8 + $0x198] sm:$0xff] %v1302_v18  ;;  %v1714_v21 = vadd.f32 %v1650_v17, %v1302_v18  ;;  %v887_v22 = vadd.f32 %v886_v20, %v677_v19 }
 0x250   :  { %1778 = vst [vmem:[#allocation9 + $0x198] sm:$0xff] %v1714_v21 }
 0x251   :  { %v1095_v23 = vpop.f32.mrf.mxu2  ;;  %v1304_v24 = vpop.f32.mrf.mxu3 }
 0x252   :  { %v1096_v25 = vadd.f32 %v1095_v23, %v887_v22 }
 0x254   :  { %v1305_v27 = vadd.f32 %v1304_v24, %v1096_v25  ;;  %v1658_v25 = vld [vmem:[#allocation6 + $0x1d8] sm:$0xff] }
 0x255   :  { %v680_v28 = vpop.f32.mrf.mxu0  ;;  %v889_v29 = vpop.f32.mrf.mxu1 }
 0x256   :  { %1587 = vst [vmem:[#allocation8 + $0x1a0] sm:$0xff] %v1305_v27  ;;  %v1715_v30 = vadd.f32 %v1651_v26, %v1305_v27  ;;  %v890_v31 = vadd.f32 %v889_v29, %v680_v28 }
 0x258   :  { %1779 = vst [vmem:[#allocation9 + $0x1a0] sm:$0xff] %v1715_v30 }
 0x259   :  { %v1098_v32 = vpop.f32.mrf.mxu2  ;;  %v1307_v33 = vpop.f32.mrf.mxu3 }
 0x25a   :  { %v1099_v34 = vadd.f32 %v1098_v32, %v890_v31 }
 0x25c   :  { %v1308_v36 = vadd.f32 %v1307_v33, %v1099_v34  ;;  %v1659_v34 = vld [vmem:[#allocation6 + $0x1e0] sm:$0xff] }
 0x25d   :  { %v683_v37 = vpop.f32.mrf.mxu0  ;;  %v892_v38 = vpop.f32.mrf.mxu1 }
 0x25e   :  { %1588 = vst [vmem:[#allocation8 + $0x1a8] sm:$0xff] %v1308_v36  ;;  %v1716_v39 = vadd.f32 %v1652_v35, %v1308_v36  ;;  %v893_v40 = vadd.f32 %v892_v38, %v683_v37 }
 0x260   :  { %1780 = vst [vmem:[#allocation9 + $0x1a8] sm:$0xff] %v1716_v39 }
 0x261   :  { %v1101_v41 = vpop.f32.mrf.mxu2  ;;  %v1310_v42 = vpop.f32.mrf.mxu3 }
 0x262   :  { %v1102_v43 = vadd.f32 %v1101_v41, %v893_v40 }
 0x264   :  { %v1311_v45 = vadd.f32 %v1310_v42, %v1102_v43  ;;  %v1660_v43 = vld [vmem:[#allocation6 + $0x1e8] sm:$0xff] }
 0x265   :  { %v686_v46 = vpop.f32.mrf.mxu0  ;;  %v895_v47 = vpop.f32.mrf.mxu1 }
 0x266   :  { %1589 = vst [vmem:[#allocation8 + $0x1b0] sm:$0xff] %v1311_v45  ;;  %v1717_v48 = vadd.f32 %v1653_v44, %v1311_v45  ;;  %v896_v49 = vadd.f32 %v895_v47, %v686_v46 }
 0x268   :  { %1781 = vst [vmem:[#allocation9 + $0x1b0] sm:$0xff] %v1717_v48 }
 0x269   :  { %v1104_v50 = vpop.f32.mrf.mxu2  ;;  %v1313_v51 = vpop.f32.mrf.mxu3 }
 0x26a   :  { %v1105_v52 = vadd.f32 %v1104_v50, %v896_v49 }
 0x26c   :  { %v1314_v54 = vadd.f32 %v1313_v51, %v1105_v52  ;;  %v1661_v52 = vld [vmem:[#allocation6 + $0x1f0] sm:$0xff] }
 0x26d   :  { %v689_v55 = vpop.f32.mrf.mxu0  ;;  %v898_v56 = vpop.f32.mrf.mxu1 }
 0x26e   :  { %1590 = vst [vmem:[#allocation8 + $0x1b8] sm:$0xff] %v1314_v54  ;;  %v1718_v57 = vadd.f32 %v1654_v53, %v1314_v54  ;;  %v899_v58 = vadd.f32 %v898_v56, %v689_v55 }
 0x270   :  { %1782 = vst [vmem:[#allocation9 + $0x1b8] sm:$0xff] %v1718_v57 }
 0x271   :  { %v1107_v59 = vpop.f32.mrf.mxu2  ;;  %v1316_v60 = vpop.f32.mrf.mxu3 }
 0x272   :  { %v1108_v61 = vadd.f32 %v1107_v59, %v899_v58 }
 0x274   :  { %v1317_v63 = vadd.f32 %v1316_v60, %v1108_v61  ;;  %v1662_v61 = vld [vmem:[#allocation6 + $0x1f8] sm:$0xff] }
 0x275   :  { %v692_v0 = vpop.f32.mrf.mxu0  ;;  %v901_v1 = vpop.f32.mrf.mxu1 }
 0x276   :  { %1591 = vst [vmem:[#allocation8 + $0x1c0] sm:$0xff] %v1317_v63  ;;  %v1719_v2 = vadd.f32 %v1655_v62, %v1317_v63  ;;  %v902_v3 = vadd.f32 %v901_v1, %v692_v0 }
 0x278   :  { %1783 = vst [vmem:[#allocation9 + $0x1c0] sm:$0xff] %v1719_v2 }
 0x279   :  { %v1110_v4 = vpop.f32.mrf.mxu2  ;;  %v1319_v5 = vpop.f32.mrf.mxu3 }
 0x27a   :  { %v1111_v6 = vadd.f32 %v1110_v4, %v902_v3 }
 0x27c   :  { %v1320_v8 = vadd.f32 %v1319_v5, %v1111_v6 }
 0x27d   :  { %v695_v9 = vpop.f32.mrf.mxu0  ;;  %v904_v10 = vpop.f32.mrf.mxu1 }
 0x27e   :  { %1592 = vst [vmem:[#allocation8 + $0x1c8] sm:$0xff] %v1320_v8  ;;  %v1720_v11 = vadd.f32 %v1656_v7, %v1320_v8  ;;  %v905_v12 = vadd.f32 %v904_v10, %v695_v9 }
 0x280   :  { %1784 = vst [vmem:[#allocation9 + $0x1c8] sm:$0xff] %v1720_v11 }
 0x281   :  { %v1113_v13 = vpop.f32.mrf.mxu2  ;;  %v1322_v14 = vpop.f32.mrf.mxu3 }
 0x282   :  { %v1114_v15 = vadd.f32 %v1113_v13, %v905_v12 }
 0x284   :  { %v1323_v17 = vadd.f32 %v1322_v14, %v1114_v15 }
 0x285   :  { %v698_v18 = vpop.f32.mrf.mxu0  ;;  %v907_v19 = vpop.f32.mrf.mxu1 }
 0x286   :  { %1593 = vst [vmem:[#allocation8 + $0x1d0] sm:$0xff] %v1323_v17  ;;  %v1721_v20 = vadd.f32 %v1657_v16, %v1323_v17  ;;  %v908_v21 = vadd.f32 %v907_v19, %v698_v18 }
 0x288   :  { %1785 = vst [vmem:[#allocation9 + $0x1d0] sm:$0xff] %v1721_v20 }
 0x289   :  { %v1116_v22 = vpop.f32.mrf.mxu2  ;;  %v1325_v23 = vpop.f32.mrf.mxu3 }
 0x28a   :  { %v1117_v24 = vadd.f32 %v1116_v22, %v908_v21 }
 0x28c   :  { %v1326_v26 = vadd.f32 %v1325_v23, %v1117_v24 }
 0x28d   :  { %v701_v27 = vpop.f32.mrf.mxu0  ;;  %v910_v28 = vpop.f32.mrf.mxu1 }
 0x28e   :  { %1594 = vst [vmem:[#allocation8 + $0x1d8] sm:$0xff] %v1326_v26  ;;  %v1722_v29 = vadd.f32 %v1658_v25, %v1326_v26  ;;  %v911_v30 = vadd.f32 %v910_v28, %v701_v27 }
 0x290   :  { %1786 = vst [vmem:[#allocation9 + $0x1d8] sm:$0xff] %v1722_v29 }
 0x291   :  { %v1119_v31 = vpop.f32.mrf.mxu2  ;;  %v1328_v32 = vpop.f32.mrf.mxu3 }
 0x292   :  { %v1120_v33 = vadd.f32 %v1119_v31, %v911_v30 }
 0x294   :  { %v1329_v35 = vadd.f32 %v1328_v32, %v1120_v33 }
 0x295   :  { %v704_v36 = vpop.f32.mrf.mxu0  ;;  %v913_v37 = vpop.f32.mrf.mxu1 }
 0x296   :  { %1595 = vst [vmem:[#allocation8 + $0x1e0] sm:$0xff] %v1329_v35  ;;  %v1723_v38 = vadd.f32 %v1659_v34, %v1329_v35  ;;  %v914_v39 = vadd.f32 %v913_v37, %v704_v36 }
 0x298   :  { %1787 = vst [vmem:[#allocation9 + $0x1e0] sm:$0xff] %v1723_v38 }
 0x299   :  { %v1122_v40 = vpop.f32.mrf.mxu2  ;;  %v1331_v41 = vpop.f32.mrf.mxu3 }
 0x29a   :  { %v1123_v42 = vadd.f32 %v1122_v40, %v914_v39 }
 0x29c   :  { %v1332_v44 = vadd.f32 %v1331_v41, %v1123_v42 }
 0x29d   :  { %v707_v45 = vpop.f32.mrf.mxu0  ;;  %v916_v46 = vpop.f32.mrf.mxu1 }
 0x29e   :  { %1596 = vst [vmem:[#allocation8 + $0x1e8] sm:$0xff] %v1332_v44  ;;  %v1724_v47 = vadd.f32 %v1660_v43, %v1332_v44  ;;  %v917_v48 = vadd.f32 %v916_v46, %v707_v45 }
 0x2a0   :  { %1788 = vst [vmem:[#allocation9 + $0x1e8] sm:$0xff] %v1724_v47 }
 0x2a1   :  { %v1125_v49 = vpop.f32.mrf.mxu2  ;;  %v1334_v50 = vpop.f32.mrf.mxu3 }
 0x2a2   :  { %v1126_v51 = vadd.f32 %v1125_v49, %v917_v48 }
 0x2a4   :  { %v1335_v53 = vadd.f32 %v1334_v50, %v1126_v51 }
 0x2a5   :  { %v710_v54 = vpop.f32.mrf.mxu0  ;;  %v919_v55 = vpop.f32.mrf.mxu1 }
 0x2a6   :  { %1597 = vst [vmem:[#allocation8 + $0x1f0] sm:$0xff] %v1335_v53  ;;  %v1725_v56 = vadd.f32 %v1661_v52, %v1335_v53  ;;  %v920_v57 = vadd.f32 %v919_v55, %v710_v54 }
 0x2a8   :  { %1789 = vst [vmem:[#allocation9 + $0x1f0] sm:$0xff] %v1725_v56 }
 0x2a9   :  { %v1128_v58 = vpop.f32.mrf.mxu2  ;;  %v1337_v59 = vpop.f32.mrf.mxu3 }
 0x2aa   :  { %v1129_v60 = vadd.f32 %v1128_v58, %v920_v57 }
 0x2ac   :  { %v1338_v62 = vadd.f32 %v1337_v59, %v1129_v60 }
 0x2ae   :  { %1598 = vst [vmem:[#allocation8 + $0x1f8] sm:$0xff] %v1338_v62  ;;  %v1726_v63 = vadd.f32 %v1662_v61, %v1338_v62 }
 0x2af   :  { %1803 = dma.vmem_to_hbm [thread:$0]  %s1796_s25, 8192, %s1798_s29, [#allocation5], %s1945_s27, %s1945_s27, %s1946_s28  }
 0x2b0   :  { %1790 = vst [vmem:[#allocation9 + $0x1f8] sm:$0xff] %v1726_v63 }
 0x2b1   :  { %1816 = dma.vmem_to_hbm [thread:$0]  %s1809_s30, 8192, %s1811_s7, [#allocation10], %s1945_s27, %s1945_s27, %s1946_s28  }
 0x2b2   :  { %1937 = dma.done.wait [#allocation5], 8192  }
 0x2b3   :  { %1938 = vsyncadd [#allocation5], 4294959104 }
 0x2b4   :  { %1939 = dma.done.wait [#allocation10], 8192  }
 0x2b5   :  { %1940 = vsyncadd [#allocation10], 4294959104 }
 0x2b6   :  { %1825 = vsyncpa [#allocation4], 1 }
 0x2b7   :  { %1826 = vsyncpa [#allocation7], 1 }
 0x2b8   :  { %1827 = vsyncpa [#allocation5], 1 }
 0x2b9   :  { %1828 = vsyncpa [#allocation10], 1 }

</bundles_post_ra>
